<compile_context>
chip_gen: v7x
topology: tpu7x:2x2x1
jax: 0.10.0
libtpu: 0.0.40
codegen_flags: <defaults>
</compile_context>

<pallas_src>
import jax
import jax.numpy as jnp
import numpy as np
from jax.experimental import pallas as pl
from jax.experimental.pallas import tpu as pltpu


_SQRT1_2 = 0.7071067811865476


def _erf(x):
    """erf via Abramowitz & Stegun 7.1.26 (max abs err ~1.5e-7); VPU/EUP only."""
    p = 0.3275911
    a1, a2, a3, a4, a5 = (0.254829592, -0.284496736, 1.421413741,
                          -1.453152027, 1.061405429)
    ax = jnp.abs(x)
    t = 1.0 / (1.0 + p * ax)
    poly = ((((a5 * t + a4) * t + a3) * t + a2) * t + a1) * t
    y = 1.0 - poly * jnp.exp(-ax * ax)
    return jnp.where(x >= 0.0, y, -y)


def _gelu_exact(x):
    """Exact (erf-based) GELU, matching PyTorch F.gelu default."""
    return 0.5 * x * (1.0 + _erf(x * _SQRT1_2))


def _make_kernel(H, W, hidden):
    HW = H * W
    hidden2 = 2 * hidden

    def kernel(x_ref, win_ref, bin_ref, wdw_ref, bdw_ref, wout_ref, bout_ref,
               out_ref):
        x = x_ref[0]                                         # (Cin, HW) bf16

        # ---- project_in: 1x1 conv == one deep channel-contraction matmul ----
        y = jnp.dot(win_ref[...], x, preferred_element_type=jnp.float32)
        y = y + bin_ref[...]                                 # (2h, HW) f32

        # ---- depthwise 3x3 "same" conv: 9 shifted taps on a flat padded value
        zpad = jnp.zeros((hidden2, W + 1), jnp.float32)
        ypad = jnp.concatenate([zpad, y, zpad], axis=1)      # (2h, HW + 2W + 2)

        col = jax.lax.broadcasted_iota(jnp.int32, (1, HW), 1) % W
        left_ok = col >= 1            # valid source when dx == -1
        right_ok = col <= W - 2       # valid source when dx == +1

        acc = jnp.zeros((hidden2, HW), jnp.float32)
        for dy in (-1, 0, 1):
            for dx in (-1, 0, 1):
                k = (dy + 1) * 3 + (dx + 1)                  # tap index (ky*3+kx)
                start = (W + 1) + dy * W + dx                # static lane offset
                tap = ypad[:, start:start + HW]              # (2h, HW)
                if dx == -1:
                    tap = jnp.where(left_ok, tap, 0.0)
                elif dx == 1:
                    tap = jnp.where(right_ok, tap, 0.0)
                acc = acc + tap * wdw_ref[:, k:k + 1]        # per-channel weight
        ydw = acc + bdw_ref[...]                             # (2h, HW) f32

        # ---- gated GELU: chunk along channels, gelu(x1) * x2 ----
        x1 = ydw[:hidden, :]
        x2 = ydw[hidden:, :]
        g = (_gelu_exact(x1) * x2).astype(jnp.bfloat16)      # (h, HW)

        # ---- project_out: 1x1 conv, lane-dense (dim, H*W) output ----
        out = jnp.dot(wout_ref[...], g, preferred_element_type=jnp.float32)
        out_ref[0] = (out + bout_ref[...]).astype(out_ref.dtype)

    return kernel


def gdfn_forward(x_nchw, params):
    """x_nchw: (N, dim, H, W) float32 -> (N, dim, H, W) float32."""
    N, C, H, W = x_nchw.shape
    HW = H * W
    h2, c_in = params['w_in'].shape
    hidden = h2 // 2
    assert c_in == C and params['w_out'].shape == (C, hidden)

    # NCHW is already channels-as-rows / spatial-minor: reshape only, no transpose.
    x = x_nchw.reshape(N, C, HW).astype(jnp.bfloat16)
    w_in = params['w_in'].astype(jnp.bfloat16)               # (2h, C)
    b_in = params['b_in'].reshape(h2, 1).astype(jnp.float32)
    w_dw = params['w_dw'].reshape(h2, 9).astype(jnp.float32)  # (2h, 9) per-tap
    b_dw = params['b_dw'].reshape(h2, 1).astype(jnp.float32)
    w_out = params['w_out'].astype(jnp.bfloat16)              # (C, h)
    b_out = params['b_out'].reshape(C, 1).astype(jnp.float32)

    out = pl.pallas_call(
        _make_kernel(H, W, hidden),
        out_shape=jax.ShapeDtypeStruct((N, C, HW), jnp.float32),
        grid_spec=pltpu.PrefetchScalarGridSpec(
            num_scalar_prefetch=0,
            grid=(N,),
            in_specs=[
                pl.BlockSpec((1, C, HW), lambda n: (n, 0, 0)),
                # Weights/biases: constant index_map -> stay resident across steps.
                pl.BlockSpec((h2, C), lambda n: (0, 0)),
                pl.BlockSpec((h2, 1), lambda n: (0, 0)),
                pl.BlockSpec((h2, 9), lambda n: (0, 0)),
                pl.BlockSpec((h2, 1), lambda n: (0, 0)),
                pl.BlockSpec((C, hidden), lambda n: (0, 0)),
                pl.BlockSpec((C, 1), lambda n: (0, 0)),
            ],
            out_specs=pl.BlockSpec((1, C, HW), lambda n: (n, 0, 0)),
        ),
        compiler_params=pltpu.CompilerParams(
            dimension_semantics=("parallel",),
            vmem_limit_bytes=32 * 1024 * 1024),
    )(x, w_in, b_in, w_dw, b_dw, w_out, b_out)

    return out.reshape(N, C, H, W)


def init_params(key, dim, hidden):
    """Synthetic parameters with GDFN's shapes (1x1 / depthwise-3x3 / 1x1)."""
    ks = jax.random.split(key, 6)
    s = 0.1
    h2 = 2 * hidden
    return {
        'w_in': s * jax.random.normal(ks[0], (h2, dim), jnp.float32),
        'b_in': s * jax.random.normal(ks[1], (h2,), jnp.float32),
        'w_dw': s * jax.random.normal(ks[2], (h2, 3, 3), jnp.float32),
        'b_dw': s * jax.random.normal(ks[3], (h2,), jnp.float32),
        'w_out': s * jax.random.normal(ks[4], (dim, hidden), jnp.float32),
        'b_out': s * jax.random.normal(ks[5], (dim,), jnp.float32),
    }


# Pure-JAX reference (correctness check only).
def ref_forward(x, params):
    dn = ('NCHW', 'OIHW', 'NCHW')
    h2 = params['w_in'].shape[0]
    y = jax.lax.conv_general_dilated(
        x, params['w_in'][:, :, None, None], (1, 1), 'VALID',
        dimension_numbers=dn) + params['b_in'][None, :, None, None]
    ydw = jax.lax.conv_general_dilated(
        y, params['w_dw'][:, None, :, :], (1, 1), 'SAME',
        feature_group_count=h2,
        dimension_numbers=dn) + params['b_dw'][None, :, None, None]
    x1, x2 = jnp.split(ydw, 2, axis=1)
    g = jax.nn.gelu(x1, approximate=False) * x2
    out = jax.lax.conv_general_dilated(
        g, params['w_out'][:, :, None, None], (1, 1), 'VALID',
        dimension_numbers=dn) + params['b_out'][None, :, None, None]
    return out


if __name__ == "__main__":
    key = jax.random.PRNGKey(0)
    k_x, k_p = jax.random.split(key, 2)

    # Small shapes consistent with GDFN: dim=8, ffn_expansion_factor=2 -> hidden=16.
    N, dim, H, W = 2, 8, 16, 16
    hidden = int(dim * 2.0)

    x = jax.random.normal(k_x, (N, dim, H, W), jnp.float32)   # PyTorch NCHW input
    params = init_params(k_p, dim, hidden)

    out = jax.block_until_ready(gdfn_forward(x, params))
    ref = ref_forward(x, params)
    # bf16 matmul operands (f32 accumulation) -> loose-but-meaningful tolerance.
    np.testing.assert_allclose(np.asarray(out), np.asarray(ref),
                               atol=1e-2, rtol=1e-2)

    print("KERNEL_OK")
</pallas_src>

<mosaic_0001>
module attributes {stable_mosaic.version = 11 : i64} {
  func.func @kernel(%arg0: i32, %arg1: memref<1x8x256xbf16, #tpu.memory_space<vmem>>, %arg2: memref<32x8xbf16, #tpu.memory_space<vmem>>, %arg3: memref<32x1xf32, #tpu.memory_space<vmem>>, %arg4: memref<32x9xf32, #tpu.memory_space<vmem>>, %arg5: memref<32x1xf32, #tpu.memory_space<vmem>>, %arg6: memref<8x16xbf16, #tpu.memory_space<vmem>>, %arg7: memref<8x1xf32, #tpu.memory_space<vmem>>, %arg8: memref<1x8x256xf32, #tpu.memory_space<vmem>>) attributes {dimension_semantics = [#tpu.dimension_semantics<parallel>], iteration_bounds = array<i64: 2>, scalar_prefetch = 0 : i64, scratch_operands = 0 : i64, tpu.core_type = #tpu.core_type<tc>, window_params = [{transform_indices = @transform_0, window_bounds = array<i64: 1, 8, 256>}, {pipeline_mode = #tpu.pipeline_mode<synchronous>, transform_indices = @transform_1, window_bounds = array<i64: 32, 8>}, {pipeline_mode = #tpu.pipeline_mode<synchronous>, transform_indices = @transform_2, window_bounds = array<i64: 32, 1>}, {pipeline_mode = #tpu.pipeline_mode<synchronous>, transform_indices = @transform_3, window_bounds = array<i64: 32, 9>}, {pipeline_mode = #tpu.pipeline_mode<synchronous>, transform_indices = @transform_4, window_bounds = array<i64: 32, 1>}, {pipeline_mode = #tpu.pipeline_mode<synchronous>, transform_indices = @transform_5, window_bounds = array<i64: 8, 16>}, {pipeline_mode = #tpu.pipeline_mode<synchronous>, transform_indices = @transform_6, window_bounds = array<i64: 8, 1>}, {transform_indices = @transform_7, window_bounds = array<i64: 1, 8, 256>}]} {
    %c0 = arith.constant 0 : index
    %c0_0 = arith.constant 0 : index
    %c0_1 = arith.constant 0 : index
    %0 = vector.load %arg1[%c0, %c0_0, %c0_1] : memref<1x8x256xbf16, #tpu.memory_space<vmem>>, vector<1x8x256xbf16>
    %1 = vector.shape_cast %0 : vector<1x8x256xbf16> to vector<8x256xbf16>
    %c0_2 = arith.constant 0 : index
    %c0_3 = arith.constant 0 : index
    %2 = vector.load %arg2[%c0_2, %c0_3] : memref<32x8xbf16, #tpu.memory_space<vmem>>, vector<32x8xbf16>
    %cst = arith.constant dense<0.000000e+00> : vector<32x256xf32>
    %3 = tpu.matmul %2, %1, %cst {dimension_numbers = #tpu.dot_dimension_numbers<[1], [0], [0], [1], [0, 0, 1, 1], [], []>} : vector<32x8xbf16>, vector<8x256xbf16>, vector<32x256xf32> -> vector<32x256xf32>
    %c0_4 = arith.constant 0 : index
    %c0_5 = arith.constant 0 : index
    %4 = vector.load %arg3[%c0_4, %c0_5] : memref<32x1xf32, #tpu.memory_space<vmem>>, vector<32x1xf32>
    %5 = vector.broadcast %4 : vector<32x1xf32> to vector<32x256xf32>
    %6 = arith.addf %3, %5 : vector<32x256xf32>
    %cst_6 = arith.constant 0.000000e+00 : f32
    %7 = vector.broadcast %cst_6 : f32 to vector<32x17xf32>
    %8 = tpu.concatenate %7, %6, %7 in 1 : vector<32x17xf32>, vector<32x256xf32>, vector<32x17xf32> -> vector<32x290xf32>
    %9 = tpu.iota {dimensions = array<i32: 1>} : vector<1x256xi32>
    %c16_i32 = arith.constant 16 : i32
    %c0_i32 = arith.constant 0 : i32
    %10 = arith.cmpi eq, %c16_i32, %c0_i32 : i32
    %c1_i32 = arith.constant 1 : i32
    %11 = arith.select %10, %c1_i32, %c16_i32 : i32
    %12 = vector.broadcast %11 : i32 to vector<1x256xi32>
    %13 = arith.remsi %9, %12 : vector<1x256xi32>
    %c0_i32_7 = arith.constant 0 : i32
    %14 = vector.broadcast %c0_i32_7 : i32 to vector<1x256xi32>
    %15 = arith.cmpi ne, %13, %14 : vector<1x256xi32>
    %c0_i32_8 = arith.constant 0 : i32
    %16 = vector.broadcast %c0_i32_8 : i32 to vector<1x256xi32>
    %17 = arith.cmpi slt, %13, %16 : vector<1x256xi32>
    %c0_i32_9 = arith.constant 0 : i32
    %18 = arith.cmpi slt, %11, %c0_i32_9 : i32
    %19 = vector.broadcast %18 : i1 to vector<1x256xi1>
    %20 = vector.broadcast %19 : vector<1x256xi1> to vector<1x256xi1>
    %21 = arith.xori %17, %20 : vector<1x256xi1>
    %22 = arith.andi %21, %15 : vector<1x256xi1>
    %23 = vector.broadcast %11 : i32 to vector<1x256xi32>
    %24 = arith.addi %13, %23 : vector<1x256xi32>
    %25 = arith.select %22, %24, %13 : vector<1x256xi1>, vector<1x256xi32>
    %c1_i32_10 = arith.constant 1 : i32
    %26 = vector.broadcast %c1_i32_10 : i32 to vector<1x256xi32>
    %27 = arith.cmpi sge, %25, %26 : vector<1x256xi32>
    %c14_i32 = arith.constant 14 : i32
    %28 = vector.broadcast %c14_i32 : i32 to vector<1x256xi32>
    %29 = arith.cmpi sle, %25, %28 : vector<1x256xi32>
    %cst_11 = arith.constant 0.000000e+00 : f32
    %30 = vector.broadcast %cst_11 : f32 to vector<32x256xf32>
    %31 = vector.extract_strided_slice %8 {offsets = [0, 0], sizes = [32, 256], strides = [1, 1]} : vector<32x290xf32> to vector<32x256xf32>
    %cst_12 = arith.constant 0.000000e+00 : f32
    %32 = vector.shape_cast %27 : vector<1x256xi1> to vector<1x256xi1>
    %33 = vector.broadcast %32 : vector<1x256xi1> to vector<32x256xi1>
    %34 = vector.broadcast %cst_12 : f32 to vector<32x256xf32>
    %35 = arith.select %33, %31, %34 : vector<32x256xi1>, vector<32x256xf32>
    %c0_13 = arith.constant 0 : index
    %c0_14 = arith.constant 0 : index
    %36 = vector.load %arg4[%c0_13, %c0_14] : memref<32x9xf32, #tpu.memory_space<vmem>>, vector<32x1xf32>
    %37 = vector.broadcast %36 : vector<32x1xf32> to vector<32x256xf32>
    %38 = arith.mulf %35, %37 : vector<32x256xf32>
    %39 = arith.addf %30, %38 : vector<32x256xf32>
    %40 = vector.extract_strided_slice %8 {offsets = [0, 1], sizes = [32, 256], strides = [1, 1]} : vector<32x290xf32> to vector<32x256xf32>
    %c0_15 = arith.constant 0 : index
    %c1 = arith.constant 1 : index
    %41 = vector.load %arg4[%c0_15, %c1] : memref<32x9xf32, #tpu.memory_space<vmem>>, vector<32x1xf32>
    %42 = vector.broadcast %41 : vector<32x1xf32> to vector<32x256xf32>
    %43 = arith.mulf %40, %42 : vector<32x256xf32>
    %44 = arith.addf %39, %43 : vector<32x256xf32>
    %45 = vector.extract_strided_slice %8 {offsets = [0, 2], sizes = [32, 256], strides = [1, 1]} : vector<32x290xf32> to vector<32x256xf32>
    %cst_16 = arith.constant 0.000000e+00 : f32
    %46 = vector.shape_cast %29 : vector<1x256xi1> to vector<1x256xi1>
    %47 = vector.broadcast %46 : vector<1x256xi1> to vector<32x256xi1>
    %48 = vector.broadcast %cst_16 : f32 to vector<32x256xf32>
    %49 = arith.select %47, %45, %48 : vector<32x256xi1>, vector<32x256xf32>
    %c0_17 = arith.constant 0 : index
    %c2 = arith.constant 2 : index
    %50 = vector.load %arg4[%c0_17, %c2] : memref<32x9xf32, #tpu.memory_space<vmem>>, vector<32x1xf32>
    %51 = vector.broadcast %50 : vector<32x1xf32> to vector<32x256xf32>
    %52 = arith.mulf %49, %51 : vector<32x256xf32>
    %53 = arith.addf %44, %52 : vector<32x256xf32>
    %54 = vector.extract_strided_slice %8 {offsets = [0, 16], sizes = [32, 256], strides = [1, 1]} : vector<32x290xf32> to vector<32x256xf32>
    %cst_18 = arith.constant 0.000000e+00 : f32
    %55 = vector.shape_cast %27 : vector<1x256xi1> to vector<1x256xi1>
    %56 = vector.broadcast %55 : vector<1x256xi1> to vector<32x256xi1>
    %57 = vector.broadcast %cst_18 : f32 to vector<32x256xf32>
    %58 = arith.select %56, %54, %57 : vector<32x256xi1>, vector<32x256xf32>
    %c0_19 = arith.constant 0 : index
    %c3 = arith.constant 3 : index
    %59 = vector.load %arg4[%c0_19, %c3] : memref<32x9xf32, #tpu.memory_space<vmem>>, vector<32x1xf32>
    %60 = vector.broadcast %59 : vector<32x1xf32> to vector<32x256xf32>
    %61 = arith.mulf %58, %60 : vector<32x256xf32>
    %62 = arith.addf %53, %61 : vector<32x256xf32>
    %63 = vector.extract_strided_slice %8 {offsets = [0, 17], sizes = [32, 256], strides = [1, 1]} : vector<32x290xf32> to vector<32x256xf32>
    %c0_20 = arith.constant 0 : index
    %c4 = arith.constant 4 : index
    %64 = vector.load %arg4[%c0_20, %c4] : memref<32x9xf32, #tpu.memory_space<vmem>>, vector<32x1xf32>
    %65 = vector.broadcast %64 : vector<32x1xf32> to vector<32x256xf32>
    %66 = arith.mulf %63, %65 : vector<32x256xf32>
    %67 = arith.addf %62, %66 : vector<32x256xf32>
    %68 = vector.extract_strided_slice %8 {offsets = [0, 18], sizes = [32, 256], strides = [1, 1]} : vector<32x290xf32> to vector<32x256xf32>
    %cst_21 = arith.constant 0.000000e+00 : f32
    %69 = vector.shape_cast %29 : vector<1x256xi1> to vector<1x256xi1>
    %70 = vector.broadcast %69 : vector<1x256xi1> to vector<32x256xi1>
    %71 = vector.broadcast %cst_21 : f32 to vector<32x256xf32>
    %72 = arith.select %70, %68, %71 : vector<32x256xi1>, vector<32x256xf32>
    %c0_22 = arith.constant 0 : index
    %c5 = arith.constant 5 : index
    %73 = vector.load %arg4[%c0_22, %c5] : memref<32x9xf32, #tpu.memory_space<vmem>>, vector<32x1xf32>
    %74 = vector.broadcast %73 : vector<32x1xf32> to vector<32x256xf32>
    %75 = arith.mulf %72, %74 : vector<32x256xf32>
    %76 = arith.addf %67, %75 : vector<32x256xf32>
    %77 = vector.extract_strided_slice %8 {offsets = [0, 32], sizes = [32, 256], strides = [1, 1]} : vector<32x290xf32> to vector<32x256xf32>
    %cst_23 = arith.constant 0.000000e+00 : f32
    %78 = vector.shape_cast %27 : vector<1x256xi1> to vector<1x256xi1>
    %79 = vector.broadcast %78 : vector<1x256xi1> to vector<32x256xi1>
    %80 = vector.broadcast %cst_23 : f32 to vector<32x256xf32>
    %81 = arith.select %79, %77, %80 : vector<32x256xi1>, vector<32x256xf32>
    %c0_24 = arith.constant 0 : index
    %c6 = arith.constant 6 : index
    %82 = vector.load %arg4[%c0_24, %c6] : memref<32x9xf32, #tpu.memory_space<vmem>>, vector<32x1xf32>
    %83 = vector.broadcast %82 : vector<32x1xf32> to vector<32x256xf32>
    %84 = arith.mulf %81, %83 : vector<32x256xf32>
    %85 = arith.addf %76, %84 : vector<32x256xf32>
    %86 = vector.extract_strided_slice %8 {offsets = [0, 33], sizes = [32, 256], strides = [1, 1]} : vector<32x290xf32> to vector<32x256xf32>
    %c0_25 = arith.constant 0 : index
    %c7 = arith.constant 7 : index
    %87 = vector.load %arg4[%c0_25, %c7] : memref<32x9xf32, #tpu.memory_space<vmem>>, vector<32x1xf32>
    %88 = vector.broadcast %87 : vector<32x1xf32> to vector<32x256xf32>
    %89 = arith.mulf %86, %88 : vector<32x256xf32>
    %90 = arith.addf %85, %89 : vector<32x256xf32>
    %91 = vector.extract_strided_slice %8 {offsets = [0, 34], sizes = [32, 256], strides = [1, 1]} : vector<32x290xf32> to vector<32x256xf32>
    %cst_26 = arith.constant 0.000000e+00 : f32
    %92 = vector.shape_cast %29 : vector<1x256xi1> to vector<1x256xi1>
    %93 = vector.broadcast %92 : vector<1x256xi1> to vector<32x256xi1>
    %94 = vector.broadcast %cst_26 : f32 to vector<32x256xf32>
    %95 = arith.select %93, %91, %94 : vector<32x256xi1>, vector<32x256xf32>
    %c0_27 = arith.constant 0 : index
    %c8 = arith.constant 8 : index
    %96 = vector.load %arg4[%c0_27, %c8] : memref<32x9xf32, #tpu.memory_space<vmem>>, vector<32x1xf32>
    %97 = vector.broadcast %96 : vector<32x1xf32> to vector<32x256xf32>
    %98 = arith.mulf %95, %97 : vector<32x256xf32>
    %99 = arith.addf %90, %98 : vector<32x256xf32>
    %c0_28 = arith.constant 0 : index
    %c0_29 = arith.constant 0 : index
    %100 = vector.load %arg5[%c0_28, %c0_29] : memref<32x1xf32, #tpu.memory_space<vmem>>, vector<32x1xf32>
    %101 = vector.broadcast %100 : vector<32x1xf32> to vector<32x256xf32>
    %102 = arith.addf %99, %101 : vector<32x256xf32>
    %103 = vector.extract_strided_slice %102 {offsets = [0, 0], sizes = [16, 256], strides = [1, 1]} : vector<32x256xf32> to vector<16x256xf32>
    %104 = vector.extract_strided_slice %102 {offsets = [16, 0], sizes = [16, 256], strides = [1, 1]} : vector<32x256xf32> to vector<16x256xf32>
    %cst_30 = arith.constant 5.000000e-01 : f32
    %105 = vector.broadcast %cst_30 : f32 to vector<16x256xf32>
    %106 = arith.mulf %105, %103 : vector<16x256xf32>
    %cst_31 = arith.constant 0.707106769 : f32
    %107 = vector.broadcast %cst_31 : f32 to vector<16x256xf32>
    %108 = arith.mulf %103, %107 : vector<16x256xf32>
    %109 = math.absf %108 : vector<16x256xf32>
    %cst_32 = arith.constant 0.327591091 : f32
    %110 = vector.broadcast %cst_32 : f32 to vector<16x256xf32>
    %111 = arith.mulf %110, %109 : vector<16x256xf32>
    %cst_33 = arith.constant 1.000000e+00 : f32
    %112 = vector.broadcast %cst_33 : f32 to vector<16x256xf32>
    %113 = arith.addf %112, %111 : vector<16x256xf32>
    %cst_34 = arith.constant 1.000000e+00 : f32
    %114 = vector.broadcast %cst_34 : f32 to vector<16x256xf32>
    %115 = arith.divf %114, %113 : vector<16x256xf32>
    %cst_35 = arith.constant 1.06140542 : f32
    %116 = vector.broadcast %cst_35 : f32 to vector<16x256xf32>
    %117 = arith.mulf %116, %115 : vector<16x256xf32>
    %cst_36 = arith.constant -1.45315206 : f32
    %118 = vector.broadcast %cst_36 : f32 to vector<16x256xf32>
    %119 = arith.addf %117, %118 : vector<16x256xf32>
    %120 = arith.mulf %119, %115 : vector<16x256xf32>
    %cst_37 = arith.constant 1.42141378 : f32
    %121 = vector.broadcast %cst_37 : f32 to vector<16x256xf32>
    %122 = arith.addf %120, %121 : vector<16x256xf32>
    %123 = arith.mulf %122, %115 : vector<16x256xf32>
    %cst_38 = arith.constant -0.284496725 : f32
    %124 = vector.broadcast %cst_38 : f32 to vector<16x256xf32>
    %125 = arith.addf %123, %124 : vector<16x256xf32>
    %126 = arith.mulf %125, %115 : vector<16x256xf32>
    %cst_39 = arith.constant 0.254829586 : f32
    %127 = vector.broadcast %cst_39 : f32 to vector<16x256xf32>
    %128 = arith.addf %126, %127 : vector<16x256xf32>
    %129 = arith.mulf %128, %115 : vector<16x256xf32>
    %cst_40 = arith.constant 0.000000e+00 : f32
    %130 = vector.broadcast %cst_40 : f32 to vector<16x256xf32>
    %131 = arith.subf %130, %109 : vector<16x256xf32>
    %132 = arith.mulf %131, %109 : vector<16x256xf32>
    %133 = math.exp %132 : vector<16x256xf32>
    %134 = arith.mulf %129, %133 : vector<16x256xf32>
    %cst_41 = arith.constant 1.000000e+00 : f32
    %135 = vector.broadcast %cst_41 : f32 to vector<16x256xf32>
    %136 = arith.subf %135, %134 : vector<16x256xf32>
    %cst_42 = arith.constant 0.000000e+00 : f32
    %137 = vector.broadcast %cst_42 : f32 to vector<16x256xf32>
    %138 = arith.cmpf oge, %108, %137 : vector<16x256xf32>
    %cst_43 = arith.constant 0.000000e+00 : f32
    %139 = vector.broadcast %cst_43 : f32 to vector<16x256xf32>
    %140 = arith.subf %139, %136 : vector<16x256xf32>
    %141 = arith.select %138, %136, %140 : vector<16x256xi1>, vector<16x256xf32>
    %cst_44 = arith.constant 1.000000e+00 : f32
    %142 = vector.broadcast %cst_44 : f32 to vector<16x256xf32>
    %143 = arith.addf %142, %141 : vector<16x256xf32>
    %144 = arith.mulf %106, %143 : vector<16x256xf32>
    %145 = arith.mulf %144, %104 : vector<16x256xf32>
    %146 = arith.truncf %145 : vector<16x256xf32> to vector<16x256xbf16>
    %c0_45 = arith.constant 0 : index
    %c0_46 = arith.constant 0 : index
    %147 = vector.load %arg6[%c0_45, %c0_46] : memref<8x16xbf16, #tpu.memory_space<vmem>>, vector<8x16xbf16>
    %cst_47 = arith.constant dense<0.000000e+00> : vector<8x256xf32>
    %148 = tpu.matmul %147, %146, %cst_47 {dimension_numbers = #tpu.dot_dimension_numbers<[1], [0], [0], [1], [0, 0, 1, 1], [], []>} : vector<8x16xbf16>, vector<16x256xbf16>, vector<8x256xf32> -> vector<8x256xf32>
    %c0_48 = arith.constant 0 : index
    %c0_49 = arith.constant 0 : index
    %149 = vector.load %arg7[%c0_48, %c0_49] : memref<8x1xf32, #tpu.memory_space<vmem>>, vector<8x1xf32>
    %150 = vector.broadcast %149 : vector<8x1xf32> to vector<8x256xf32>
    %151 = arith.addf %148, %150 : vector<8x256xf32>
    %c0_50 = arith.constant 0 : index
    %c0_51 = arith.constant 0 : index
    %c0_52 = arith.constant 0 : index
    %152 = vector.load %arg8[%c0_50, %c0_51, %c0_52] : memref<1x8x256xf32, #tpu.memory_space<vmem>>, vector<1x8x256xf32>
    %153 = vector.shape_cast %152 : vector<1x8x256xf32> to vector<8x256xf32>
    %154 = vector.shape_cast %151 : vector<8x256xf32> to vector<1x8x256xf32>
    tpu.vector_store %arg8[%c0_50, %c0_51, %c0_52], %154 {strides = array<i32>} : memref<1x8x256xf32, #tpu.memory_space<vmem>>, vector<1x8x256xf32>,
    return
  }
  func.func @transform_0(%arg0: i32) -> (i32, i32, i32) {
    %c0_i32 = arith.constant 0 : i32
    %c0_i32_0 = arith.constant 0 : i32
    %c0_i32_1 = arith.constant 0 : i32
    return %arg0, %c0_i32, %c0_i32_0 : i32, i32, i32
  }
  func.func @transform_1(%arg0: i32) -> (i32, i32) {
    %c0_i32 = arith.constant 0 : i32
    %c0_i32_0 = arith.constant 0 : i32
    %c0_i32_1 = arith.constant 0 : i32
    return %c0_i32, %c0_i32_0 : i32, i32
  }
  func.func @transform_2(%arg0: i32) -> (i32, i32) {
    %c0_i32 = arith.constant 0 : i32
    %c0_i32_0 = arith.constant 0 : i32
    %c0_i32_1 = arith.constant 0 : i32
    return %c0_i32, %c0_i32_0 : i32, i32
  }
  func.func @transform_3(%arg0: i32) -> (i32, i32) {
    %c0_i32 = arith.constant 0 : i32
    %c0_i32_0 = arith.constant 0 : i32
    %c0_i32_1 = arith.constant 0 : i32
    return %c0_i32, %c0_i32_0 : i32, i32
  }
  func.func @transform_4(%arg0: i32) -> (i32, i32) {
    %c0_i32 = arith.constant 0 : i32
    %c0_i32_0 = arith.constant 0 : i32
    %c0_i32_1 = arith.constant 0 : i32
    return %c0_i32, %c0_i32_0 : i32, i32
  }
  func.func @transform_5(%arg0: i32) -> (i32, i32) {
    %c0_i32 = arith.constant 0 : i32
    %c0_i32_0 = arith.constant 0 : i32
    %c0_i32_1 = arith.constant 0 : i32
    return %c0_i32, %c0_i32_0 : i32, i32
  }
  func.func @transform_6(%arg0: i32) -> (i32, i32) {
    %c0_i32 = arith.constant 0 : i32
    %c0_i32_0 = arith.constant 0 : i32
    %c0_i32_1 = arith.constant 0 : i32
    return %c0_i32, %c0_i32_0 : i32, i32
  }
  func.func @transform_7(%arg0: i32) -> (i32, i32, i32) {
    %c0_i32 = arith.constant 0 : i32
    %c0_i32_0 = arith.constant 0 : i32
    %c0_i32_1 = arith.constant 0 : i32
    return %arg0, %c0_i32, %c0_i32_0 : i32, i32, i32
  }
}

</mosaic_0001>

<bundles_post_ra>
// kernel: tpu_custom_call.1
= control target key start
LH: loop header
LB: loop body
LE: loop exit
PB: predicated region body
PF: predicated region fallthrough
CT: control target
= control target key end

     0   :  { %12 = vsyncpa [#allocation3], 0  ;;  %s2769_s0 = inlined_call_operand.vmem [shape: bf16[2,8,256], index: 0, kind: input, shape index: {}]   ;;  %s2770_s1 = inlined_call_operand.vmem [shape: bf16[32,8], index: 1, kind: input, shape index: {}]   ;;  %s2771_s2 = inlined_call_operand.vmem [shape: f32[32,1], index: 2, kind: input, shape index: {}]   ;;  %s2772_s3 = inlined_call_operand.vmem [shape: f32[32,9], index: 3, kind: input, shape index: {}]   ;;  %s2773_s4 = inlined_call_operand.vmem [shape: f32[32,1], index: 4, kind: input, shape index: {}]   ;;  %s2774_s5 = inlined_call_operand.vmem [shape: bf16[8,16], index: 5, kind: input, shape index: {}]   ;;  %s2775_s6 = inlined_call_operand.vmem [shape: f32[8,1], index: 6, kind: input, shape index: {}]   ;;  %s2776_s7 = inlined_call_operand.hbm [shape: f32[2,8,256], index: 7, kind: output, shape index: {}]  }
   0x1   :  { %14 = vsyncpa [#allocation3 + $0x1], 0  ;;  %s1730_s24 = smov 0   ;;  %s1732_s25 = smov 0  }
   0x2   :  { %s1734_s26 = smov 0   ;;  %s1736_s27 = smov 0  }
   0x3 LB: > { %s1751_s28 = sadd.s32 4294967295, %s1669_s27   ;;  %s1479_s29 = sadd.s32 4294967294, %s1669_s27   ;;  %s1669_s27 = sphi %s1736_s27, %s2847_s27   ;;  %s1665_s26 = sphi %s1734_s26, %s2846_s26   ;;  %s1661_s25 = sphi %s1732_s25, %s2845_s25   ;;  %s1657_s24 = sphi %s1730_s24, %s2844_s24  }
   0x4   : > { %s1755_s30 = sadd.s32 1, %s1669_s27   ;;  %s179_s8 = sadd.s32 1, %s1665_s26 }
   0x5   : > { %s176_s9 = ssub.s32 %s1669_s27, %s1755_s30  ;;  %p189_p0 = scmp.ne.s32.totalorder %s1665_s26, %s1661_s25 }
   0x6   : > { %p177_p1 = scmp.eq.s32.totalorder %s176_s9, 0  ;;  %p190_p2 = scmp.eq.s32.totalorder %s1751_s28, 1 }
   0x7   : > { %p195_p3 = scmp.ne.s32.totalorder %s1661_s25, %s1657_s24  ;;  %p196_p4 = scmp.eq.s32.totalorder %s1479_s29, 1 }
   0x8   : > { %s1766_s10 = scalar_select %p177_p1, %s1665_s26, %s179_s8  }
   0x9   : > { %p1768_p5 = por %p190_p2, %p189_p0  ;;  %p1772_p6 = por %p196_p4, %p195_p3 }
   0xa   : > { %p1482_p7 = scmp.ge.s32.totalorder %s1669_s27, 1  ;;  %p240_p8 = scmp.lt.s32.totalorder %s1669_s27, 3 }
   0xc   : > { %p241_p9 = pnand %p1482_p7, %p240_p8 }
   0xe   : > { %244 = sbr.rel (%p241_p9) target bundleno = 930 (0x3a2), region = 48 }
  0x15   : > { %p272_p10 = scmp.lt.s32.totalorder %s1751_s28, 1  ;;  %v1671_v0 = vmov 0   ;;  %v1783_v1 = vld [vmem:[%s2772_s3] sm:$0xff]  ;;  %v1672_v2 = vmov 1   ;;  %v1792_v3 = vld [vmem:[%s2772_s3 + $0x10] sm:$0xff]  ;;  %vm329_vm0 = vcmask 1043456  }
  0x16   : > { %368 = vmatprep.mubr.bf16.mxu0 %v1671_v0  ;;  %1558 = vset.pattern.permute.xlu1 %v1671_v0  ;;  %v285_v4 = vld [vmem:[%s2771_s2 + $0x10] sm:$0xff]  ;;  %v286_v8 = vld [vmem:[%s2771_s2 + $0x18] sm:$0xff]  ;;  %v1589_v10 = vld [vmem:[%s2770_s1] sm:$0xff]   ;;  %vm322_vm1 = vcmask 64512   ;;  %v1673_v12 = vmov 4   ;;  %v1674_v15 = vmov 7  }
  0x17   : > { %s273_s15 = scalar_select %p272_p10, %s1751_s28, 1  ;;  %1559 = vset.pattern.permute.xlu0 %v1672_v2  ;;  %1394 = vmatprep.mubr.bf16.mxu1 %v1671_v0  ;;  %v1810_v11 = vld [vmem:[%s2772_s3 + $0x8] sm:$0xff]  ;;  %v1817_v13 = vld [vmem:[%s2772_s3 + $0x18] sm:$0xff]  ;;  %v1675_v16 = vmov 2   ;;  %v1676_v17 = vmov 3   ;;  %v1677_v18 = vmov 5  }
  0x18   : > { %522 = vperm.xlu0 %1559, %v1783_v1   ;;  %299 = vperm.xlu1 %1558, %v285_v4   ;;  %v1590_v14 = vld [vmem:[%s2770_s1 + $0x8] sm:$0xff]   ;;  %v1678_v19 = vmov 6   ;;  %v1679_v20 = vmov 8   ;;  %v283_v21 = vld [vmem:[%s2771_s2] sm:$0xff]  ;;  %v1208_v24 = vld [vmem:[%s2773_s4 + $0x18] sm:$0xff]  ;;  %s1680_s18 = smov 17  }
  0x19   : > { %s1499_s16 = sshll.u32 %s273_s15, 3  ;;  %v284_v22 = vld [vmem:[%s2771_s2 + $0x8] sm:$0xff]  ;;  %v1205_v25 = vld [vmem:[%s2773_s4] sm:$0xff]  ;;  %v1207_v26 = vld [vmem:[%s2773_s4 + $0x10] sm:$0xff]  ;;  %vm413_vm2 = vcmask 138240   ;;  %s1681_s19 = smov 112  }
  0x1a   : > { %s276_s21 = scalar_lea.vmem %s2769_s0, %s1499_s16  ;;  %v1206_v23 = vld [vmem:[%s2773_s4 + $0x8] sm:$0xff]  ;;  %s1682_s20 = smov 126   ;;  %vm646_vm3 = vcmask 1031168   ;;  %vm897_vm4 = vcmask 900096   ;;  %vm978_vm5 = vcmask 785408   ;;  %vm1148_vm6 = vcmask 769024  }
  0x1b   : > { %v278_v5 = vld [vmem:[%s276_s21] sm:$0xff]  ;;  %s1683_s21 = smov 96   ;;  %s1684_s22 = smov 110   ;;  %vm585_vm9 = vcmask 1039360   ;;  %vm727_vm10 = vcmask 916480   ;;  %vm848_vm11 = vcmask 908288  }
  0x1c   : > { %v1489_v6 = vcombine.high %v278_v5, %v278_v5  ;;  %v1488_v7 = vcombine.low %v278_v5, %v278_v5  ;;  %530 = vperm.xlu0 %1559, %v1792_v3   ;;  %304 = vperm.xlu1 %1558, %v286_v8   ;;  %s1685_s23 = smov 94   ;;  %s1686_s29 = smov 95   ;;  %vm1099_vm14 = vcmask 777216  }
  0x1d   : > { %s1687_s8 = smov 127   ;;  %s1688_s9 = smov 111  }
  0x1e   : > { %1490 = vmatprep.subr.msk.bf16.mxu0 %vm329_vm0, %v1489_v6  ;;  %v331_v9 = vsel %vm329_vm0, %v1488_v7, 0  ;;  %s269_s17 = sand.u32 1, %s1661_s25  }
  0x1f   : > { %337 = vmatpush1.bf16.msra.mxu0 %v331_v9 }
  0x20   : > { %1563 = vset.pattern.permute.xlu0 %v1673_v12  ;;  %1560 = vset.pattern.permute.xlu1 %v1672_v2 }
  0x21   : > { %789 = vperm.xlu0 %1563, %v1810_v11   ;;  %526 = vperm.xlu1 %1560, %v1810_v11  }
  0x22   : > { %1491 = vmatmul.mubr.msk.bf16.vlgmr.msra.gmra.mrb[0].mxu0 %vm322_vm1, %v1589_v10 }
  0x23   : > { %378 = vmatprep.mubr.bf16.mxu0 %v1671_v0 }
  0x25   : > { %797 = vperm.xlu0 %1563, %v1817_v13   ;;  %1561 = vset.pattern.permute.xlu1 %v1673_v12 }
  0x26   : > { %785 = vperm.xlu1 %1561, %v1783_v1  }
  0x29   : > { %1567 = vset.pattern.permute.xlu0 %v1674_v15 }
  0x2a   : > { %1492 = vmatmul.mubr.msk.bf16.gmra.mrb[4].mxu0 %vm322_vm1, %v1590_v14  ;;  %1044 = vperm.xlu0 %1567, %v1792_v3  }
  0x2b   : > { %1562 = vset.pattern.permute.xlu1 %v1674_v15 }
  0x2c   : > { %1036 = vperm.xlu1 %1562, %v1783_v1  }
  0x2e   : > { %1570 = vset.pattern.permute.xlu0 %v1675_v16 }
  0x2f   : > { %676 = vperm.xlu0 %1570, %v1810_v11  }
  0x30   : > { %1040 = vperm.xlu1 %1562, %v1810_v11  }
  0x33   : > { %680 = vperm.xlu0 %1570, %v1792_v3  }
  0x34   : > { %1564 = vset.pattern.permute.xlu1 %v1672_v2 }
  0x35   : > { %534 = vperm.xlu1 %1564, %v1817_v13  }
  0x37   : > { %1578 = vset.pattern.permute.xlu0 %v1676_v17 }
  0x38   : > { %765 = vperm.xlu0 %1578, %v1817_v13  }
  0x39   : > { %1565 = vset.pattern.permute.xlu1 %v1673_v12 }
  0x3a   : > { %793 = vperm.xlu1 %1565, %v1792_v3  }
  0x3c   : > { %1579 = vset.pattern.permute.xlu0 %v1677_v18 }
  0x3d   : > { %923 = vperm.xlu0 %1579, %v1783_v1  }
  0x3e   : > { %1566 = vset.pattern.permute.xlu1 %v1671_v0 }
  0x3f   : > { %487 = vperm.xlu1 %1566, %v1783_v1  }
  0x41   : > { %931 = vperm.xlu0 %1579, %v1792_v3  }
  0x43   : > { %492 = vperm.xlu1 %1566, %v1810_v11  }
  0x45   : > { %1580 = vset.pattern.permute.xlu0 %v1678_v19 }
  0x46   : > { %1008 = vperm.xlu0 %1580, %v1810_v11  }
  0x47   : > { %1568 = vset.pattern.permute.xlu1 %v1674_v15 }
  0x48   : > { %1048 = vperm.xlu1 %1568, %v1817_v13  }
  0x4a   : > { %1016 = vperm.xlu0 %1580, %v1817_v13  }
  0x4c   : > { %1569 = vset.pattern.permute.xlu1 %v1675_v16 }
  0x4d   : > { %672 = vperm.xlu1 %1569, %v1783_v1  }
  0x4e   : > { %1583 = vset.pattern.permute.xlu0 %v1679_v20 }
  0x4f   : > { %1174 = vperm.xlu0 %1583, %v1783_v1  }
  0x51   : > { %1571 = vset.pattern.permute.xlu1 %v1676_v17 }
  0x52   : > { %753 = vperm.xlu1 %1571, %v1783_v1  }
  0x53   : > { %1182 = vperm.xlu0 %1583, %v1792_v3  }
  0x56   : > { %757 = vperm.xlu1 %1571, %v1810_v11  }
  0x57   : > { %1584 = vset.pattern.permute.xlu0 %v1671_v0 }
  0x58   : > { %289 = vperm.xlu0 %1584, %v283_v21  }
  0x5a   : > { %1572 = vset.pattern.permute.xlu1 %v1677_v18 }
  0x5b   : > { %927 = vperm.xlu1 %1572, %v1810_v11  }
  0x5c   : > { %294 = vperm.xlu0 %1584, %v284_v22  }
  0x5f   : > { %1573 = vset.pattern.permute.xlu1 %v1678_v19 }
  0x60   : > { %1216 = vperm.xlu0 %1584, %v1206_v23   ;;  %1004 = vperm.xlu1 %1573, %v1783_v1  }
  0x64   : > { %497 = vperm.xlu0 %1584, %v1792_v3   ;;  %1574 = vset.pattern.permute.xlu1 %v1679_v20 }
  0x65   : > { %1178 = vperm.xlu1 %1574, %v1810_v11  }
  0x68   : > { %1226 = vperm.xlu0 %1584, %v1208_v24  }
  0x69   : > { %1575 = vset.pattern.permute.xlu1 %v1671_v0 }
  0x6a   : > { %1211 = vperm.xlu1 %1575, %v1205_v25  }
  0x6e   : > { %502 = vperm.xlu1 %1575, %v1817_v13  }
  0x72   : > { %1576 = vset.pattern.permute.xlu1 %v1675_v16 }
  0x73   : > { %684 = vperm.xlu1 %1576, %v1817_v13  }
  0x77   : > { %1577 = vset.pattern.permute.xlu1 %v1676_v17 }
  0x78   : > { %761 = vperm.xlu1 %1577, %v1792_v3  }
  0x7c   : > { %1581 = vset.pattern.permute.xlu1 %v1677_v18 }
  0x7d   : > { %935 = vperm.xlu1 %1581, %v1817_v13  }
  0x81   : > { %1582 = vset.pattern.permute.xlu1 %v1678_v19 }
  0x82   : > { %1012 = vperm.xlu1 %1582, %v1792_v3  }
  0x86   : > { %1585 = vset.pattern.permute.xlu1 %v1679_v20 }
  0x87   : > { %1186 = vperm.xlu1 %1585, %v1817_v13  }
  0x8b   : > { %1586 = vset.pattern.permute.xlu1 %v1671_v0 }
  0x8c   : > { %1221 = vperm.xlu1 %1586, %v1207_v26  }
  0x97   : > { %v1879_v27 = vpop.permute.xlu0 %522  ;;  %v300_v38 = vpop.permute.xlu1 %299 }
  0x9b   : > { %v1881_v28 = vpop.permute.xlu0 %530  ;;  %v305_v40 = vpop.permute.xlu1 %304 }
  0xa0   : > { %v1883_v29 = vpop.permute.xlu0 %789  ;;  %v1905_v42 = vpop.permute.xlu1 %526 }
  0xa4   : > { %v1885_v30 = vpop.permute.xlu0 %797 }
  0xa5   : > { %v1909_v44 = vpop.permute.xlu1 %785 }
  0xa9   : > { %v1887_v31 = vpop.permute.xlu0 %1044 }
  0xab   : > { %v1911_v46 = vpop.permute.xlu1 %1036 }
  0xae   : > { %v1889_v32 = vpop.permute.xlu0 %676 }
  0xaf   : > { %v1913_v55 = vpop.permute.xlu1 %1040 }
  0xb2   : > { %v1891_v33 = vpop.permute.xlu0 %680 }
  0xb3   : > { %2798 = vst [vmem:[#allocation5_spill] sm:$0xff] %v1891_v33 }
  0xb4   : > { %v1915_v60 = vpop.permute.xlu1 %534 }
  0xb7   : > { %v1893_v34 = vpop.permute.xlu0 %765 }
  0xb8   : > { %2799 = vst [vmem:[#allocation6_spill] sm:$0xff] %v1893_v34 }
  0xb9   : > { %v1917_v2 = vpop.permute.xlu1 %793 }
  0xbc   : > { %v1895_v35 = vpop.permute.xlu0 %923 }
  0xbe   : > { %v1919_v3 = vpop.permute.xlu1 %487 }
  0xc0   : > { %v1897_v36 = vpop.permute.xlu0 %931 }
  0xc1   : > { %2800 = vst [vmem:[#allocation7_spill] sm:$0xff] %v1897_v36 }
  0xc2   : > { %v1921_v4 = vpop.permute.xlu1 %492 }
  0xc5   : > { %v1899_v37 = vpop.permute.xlu0 %1008 }
  0xc7   : > { %v1923_v5 = vpop.permute.xlu1 %1048 }
  0xc9   : > { %v1901_v39 = vpop.permute.xlu0 %1016 }
  0xca   : > { %2801 = vst [vmem:[#allocation8_spill] sm:$0xff] %v1901_v39 }
  0xcc   : > { %v1925_v6 = vpop.permute.xlu1 %672 }
  0xce   : > { %v1903_v41 = vpop.permute.xlu0 %1174 }
  0xd1   : > { %v1927_v7 = vpop.permute.xlu1 %753 }
  0xd2   : > { %v1907_v43 = vpop.permute.xlu0 %1182 }
  0xd3   : > { %2802 = vst [vmem:[#allocation9_spill] sm:$0xff] %v1907_v43 }
  0xd5   : > { %v1929_v8 = vpop.permute.xlu1 %757 }
  0xd7   : > { %v290_v45 = vpop.permute.xlu0 %289 }
  0xda   : > { %v1931_v9 = vpop.permute.xlu1 %927 }
  0xdb   : > { %v295_v53 = vpop.permute.xlu0 %294 }
  0xdf   : > { %v1933_v10 = vpop.permute.xlu1 %1004  ;;  %v1951_v19 = vpop.permute.xlu0 %1216 }
  0xe3   : > { %v1955_v21 = vpop.permute.xlu0 %497 }
  0xe4   : > { %v1935_v11 = vpop.permute.xlu1 %1178 }
  0xe7   : > { %v1960_v24 = vpop.permute.xlu0 %1226 }
  0xe8   : > { %2810 = vst [vmem:[#allocation17_spill] sm:$0xff] %v1960_v24 }
  0xe9   : > { %v1937_v12 = vpop.permute.xlu1 %1211 }
  0xed   : > { %v1939_v13 = vpop.permute.xlu1 %502 }
  0xee   : > { %2803 = vst [vmem:[#allocation10_spill] sm:$0xff] %v1939_v13 }
  0xf2   : > { %v1941_v14 = vpop.permute.xlu1 %684 }
  0xf3   : > { %2804 = vst [vmem:[#allocation11_spill] sm:$0xff] %v1941_v14 }
  0xf5   : > { %v370_v47 = vpop.f32.mrb[0].mxu0 }
  0xf6   : > { %v371_v48 = vadd.f32 %v370_v47, %v290_v45  ;;  %v372_v49 = vpop.f32.mrb[1].mxu0 }
  0xf7   : > { %v373_v50 = vadd.f32 %v372_v49, %v290_v45  ;;  %v374_v51 = vpop.f32.mrb[2].mxu0  ;;  %v1943_v15 = vpop.permute.xlu1 %761 }
  0xf8   : > { %v376_v52 = vpop.f32.mrb[3].mxu0  ;;  %397 = vrot.lane.b32.xlu1 %v371_v48, %s1680_s18  ;;  %v375_v54 = vadd.f32 %v374_v51, %v295_v53  ;;  %2805 = vst [vmem:[#allocation12_spill] sm:$0xff] %v1943_v15 }
  0xf9   : > { %399 = vrot.lane.b32.xlu0 %v373_v50, %s1680_s18  ;;  %v377_v56 = vadd.f32 %v376_v52, %v295_v53 }
  0xfc   : > { %401 = vrot.lane.b32.xlu1 %v375_v54, %s1680_s18  ;;  %v1945_v16 = vpop.permute.xlu1 %935 }
  0xfd   : > { %v380_v57 = vpop.f32.mrb[4].mxu0  ;;  %403 = vrot.lane.b32.xlu0 %v377_v56, %s1680_s18  ;;  %2806 = vst [vmem:[#allocation13_spill] sm:$0xff] %v1945_v16 }
  0xfe   : > { %v381_v58 = vadd.f32 %v380_v57, %v300_v38  ;;  %v382_v59 = vpop.f32.mrb[5].mxu0 }
  0xff   : > { %v383_v61 = vadd.f32 %v382_v59, %v300_v38  ;;  %v384_v62 = vpop.f32.mrb[6].mxu0 }
 0x100   : > { %v386_v63 = vpop.f32.mrb[7].mxu0  ;;  %405 = vrot.lane.b32.xlu1 %v381_v58, %s1680_s18  ;;  %v385_v0 = vadd.f32 %v384_v62, %v305_v40 }
 0x101   : > { %407 = vrot.lane.b32.xlu0 %v383_v61, %s1680_s18  ;;  %v387_v1 = vadd.f32 %v386_v63, %v305_v40  ;;  %v1947_v17 = vpop.permute.xlu1 %1012 }
 0x102   : > { %2807 = vst [vmem:[#allocation14_spill] sm:$0xff] %v1947_v17 }
 0x104   : > { %409 = vrot.lane.b32.xlu1 %v385_v0, %s1680_s18 }
 0x105   : > { %411 = vrot.lane.b32.xlu0 %v387_v1, %s1680_s18  ;;  %s1483_s18 = sshll.u32 %s269_s17, 4 }
 0x106   : > { %v1949_v18 = vpop.permute.xlu1 %1186 }
 0x107   : > { %2808 = vst [vmem:[#allocation15_spill] sm:$0xff] %v1949_v18 }
 0x10b   : > { %v1953_v20 = vpop.permute.xlu1 %1221 }
 0x10c   : > { %2809 = vst [vmem:[#allocation16_spill] sm:$0xff] %v1953_v20 }
 0x16a   : > { %v398_v22 = vpop.permute.xlu1 %397 }
 0x16b   : > { %v1958_v23 = vsel %vm413_vm2, 0.0, %v398_v22  ;;  %v400_v25 = vpop.permute.xlu0 %399 }
 0x16c   : > { %703 = vrot.lane.b32.xlu1 %v1958_v23, %s1681_s19  ;;  %622 = vrot.lane.b32.xlu0 %v1958_v23, %s1682_s20  ;;  %v434_v26 = vsel %vm413_vm2, %v400_v25, 0.0  ;;  %v1975_v38 = vsel %vm413_vm2, %v398_v22, %v400_v25  ;;  %v1051_v47 = vmul.f32 %v1911_v46, %v1958_v23  ;;  %v537_v50 = vmul.f32 %v1879_v27, %v1958_v23 }
 0x16d   : > { %v538_v51 = vmul.f32 %v1879_v27, %v1975_v38  ;;  %v800_v53 = vmul.f32 %v1909_v44, %v1958_v23  ;;  %v801_v54 = vmul.f32 %v1909_v44, %v1975_v38  ;;  %v539_v56 = vmul.f32 %v1879_v27, %v434_v26 }
 0x16e   : > { %v402_v40 = vpop.permute.xlu1 %401  ;;  %v1052_v57 = vmul.f32 %v1911_v46, %v1975_v38  ;;  %v802_v27 = vmul.f32 %v1909_v44, %v434_v26  ;;  %v1053_v44 = vmul.f32 %v1911_v46, %v434_v26 }
 0x16f   : > { %v1987_v45 = vsel %vm413_vm2, 0.0, %v402_v40  ;;  %v404_v48 = vpop.permute.xlu0 %403 }
 0x170   : > { %954 = vrot.lane.b32.xlu1 %v1958_v23, %s1683_s21  ;;  %873 = vrot.lane.b32.xlu0 %v1958_v23, %s1684_s22  ;;  %v2002_v49 = vsel %vm413_vm2, %v402_v40, %v404_v48  ;;  %v435_v52 = vsel %vm413_vm2, %v404_v48, 0.0  ;;  %v540_v58 = vmul.f32 %v1905_v42, %v1987_v45  ;;  %v803_v59 = vmul.f32 %v1883_v29, %v1987_v45 }
 0x171   : > { %v541_v61 = vmul.f32 %v1905_v42, %v2002_v49  ;;  %v804_v62 = vmul.f32 %v1883_v29, %v2002_v49  ;;  %v1055_v63 = vmul.f32 %v1913_v55, %v2002_v49  ;;  %v1054_v1 = vmul.f32 %v1913_v55, %v1987_v45 }
 0x172   : > { %v406_v0 = vpop.permute.xlu1 %405  ;;  %v542_v46 = vmul.f32 %v1905_v42, %v435_v52 }
 0x173   : > { %v2065_v22 = vsel %vm413_vm2, 0.0, %v406_v0  ;;  %v408_v25 = vpop.permute.xlu0 %407 }
 0x174   : > { %626 = vrot.lane.b32.xlu1 %v434_v26, %s1682_s20  ;;  %1124 = vrot.lane.b32.xlu0 %v1958_v23, %s1685_s23  ;;  %v2076_v40 = vsel %vm413_vm2, %v408_v25, 0.0 }
 0x176   : > { %v410_v48 = vpop.permute.xlu1 %409 }
 0x177   : > { %v2086_v42 = vsel %vm413_vm2, 0.0, %v410_v48 }
 0x178   : > { %705 = vrot.lane.b32.xlu1 %v1975_v38, %s1681_s19  ;;  %624 = vrot.lane.b32.xlu0 %v1975_v38, %s1682_s20  ;;  %v809_v39 = vmul.f32 %v1885_v30, %v2086_v42 }
 0x17c   : > { %875 = vrot.lane.b32.xlu1 %v1975_v38, %s1684_s22  ;;  %707 = vrot.lane.b32.xlu0 %v434_v26, %s1681_s19 }
 0x180   : > { %877 = vrot.lane.b32.xlu1 %v434_v26, %s1684_s22  ;;  %958 = vrot.lane.b32.xlu0 %v434_v26, %s1683_s21 }
 0x184   : > { %956 = vrot.lane.b32.xlu1 %v1975_v38, %s1683_s21  ;;  %709 = vrot.lane.b32.xlu0 %v1987_v45, %s1681_s19 }
 0x188   : > { %1126 = vrot.lane.b32.xlu1 %v1975_v38, %s1685_s23  ;;  %960 = vrot.lane.b32.xlu0 %v1987_v45, %s1683_s21 }
 0x18c   : > { %1128 = vrot.lane.b32.xlu1 %v434_v26, %s1685_s23  ;;  %1075 = vrot.lane.b32.xlu0 %v1051_v47, %s1686_s29  ;;  %v805_v26 = vmul.f32 %v1883_v29, %v435_v52  ;;  %v1056_v47 = vmul.f32 %v1913_v55, %v435_v52  ;;  %v412_v29 = vpop.permute.xlu0 %411  ;;  %v2097_v55 = vsel %vm413_vm2, %v406_v0, %v408_v25 }
 0x18d   : > { %2811 = vst [vmem:[#allocation18_spill] sm:$0xff] %v2097_v55 }
 0x190   : > { %628 = vrot.lane.b32.xlu1 %v1987_v45, %s1682_s20  ;;  %630 = vrot.lane.b32.xlu0 %v2002_v49, %s1682_s20 }
 0x194   : > { %561 = vrot.lane.b32.xlu1 %v537_v50, %s1687_s8  ;;  %563 = vrot.lane.b32.xlu0 %v538_v51, %s1687_s8  ;;  %v2100_v50 = vsel %vm413_vm2, %v410_v48, %v412_v29 }
 0x195   : > { %v547_v13 = vmul.f32 %v1915_v60, %v2100_v50  ;;  %v810_v36 = vmul.f32 %v1885_v30, %v2100_v50 }
 0x198   : > { %879 = vrot.lane.b32.xlu1 %v1987_v45, %s1684_s22  ;;  %713 = vrot.lane.b32.xlu0 %v435_v52, %s1681_s19 }
 0x19c   : > { %824 = vrot.lane.b32.xlu1 %v800_v53, %s1688_s9  ;;  %881 = vrot.lane.b32.xlu0 %v2002_v49, %s1684_s22  ;;  %v544_v53 = vmul.f32 %v1881_v28, %v2097_v55 }
 0x1a0   : > { %1130 = vrot.lane.b32.xlu1 %v1987_v45, %s1685_s23  ;;  %826 = vrot.lane.b32.xlu0 %v801_v54, %s1688_s9 }
 0x1a4   : > { %632 = vrot.lane.b32.xlu1 %v435_v52, %s1682_s20  ;;  %964 = vrot.lane.b32.xlu0 %v435_v52, %s1683_s21 }
 0x1a8   : > { %565 = vrot.lane.b32.xlu1 %v539_v56, %s1687_s8  ;;  %1132 = vrot.lane.b32.xlu0 %v2002_v49, %s1685_s23 }
 0x1ac   : > { %711 = vrot.lane.b32.xlu1 %v2002_v49, %s1681_s19  ;;  %1077 = vrot.lane.b32.xlu0 %v1052_v57, %s1686_s29  ;;  %v2116_v57 = vsel %vm413_vm2, %v412_v29, 0.0 }
 0x1b0   : > { %883 = vrot.lane.b32.xlu1 %v435_v52, %s1684_s22  ;;  %567 = vrot.lane.b32.xlu0 %v540_v58, %s1687_s8 }
 0x1b4   : > { %828 = vrot.lane.b32.xlu1 %v802_v27, %s1688_s9  ;;  %830 = vrot.lane.b32.xlu0 %v803_v59, %s1688_s9 }
 0x1b8   : > { %962 = vrot.lane.b32.xlu1 %v2002_v49, %s1683_s21  ;;  %569 = vrot.lane.b32.xlu0 %v541_v61, %s1687_s8 }
 0x1bc   : > { %1134 = vrot.lane.b32.xlu1 %v435_v52, %s1685_s23  ;;  %832 = vrot.lane.b32.xlu0 %v804_v62, %s1688_s9  ;;  %v807_v62 = vmul.f32 %v1917_v2, %v2097_v55 }
 0x1c0   : > { %1079 = vrot.lane.b32.xlu1 %v1053_v44, %s1686_s29  ;;  %1083 = vrot.lane.b32.xlu0 %v1055_v63, %s1686_s29 }
 0x1c4   : > { %1081 = vrot.lane.b32.xlu1 %v1054_v1, %s1686_s29  ;;  %634 = vrot.lane.b32.xlu0 %v2065_v22, %s1682_s20 }
 0x1c8   : > { %571 = vrot.lane.b32.xlu1 %v542_v46, %s1687_s8  ;;  %885 = vrot.lane.b32.xlu0 %v2065_v22, %s1684_s22 }
 0x1cc   : > { %834 = vrot.lane.b32.xlu1 %v805_v26, %s1688_s9  ;;  %719 = vrot.lane.b32.xlu0 %v2076_v40, %s1681_s19 }
 0x1d0   : > { %1085 = vrot.lane.b32.xlu1 %v1056_v47, %s1686_s29  ;;  %970 = vrot.lane.b32.xlu0 %v2076_v40, %s1683_s21  ;;  %v438_v47 = vlaneseq }
 0x1d4   : > { %715 = vrot.lane.b32.xlu1 %v2065_v22, %s1681_s19  ;;  %721 = vrot.lane.b32.xlu0 %v2086_v42, %s1681_s19 }
 0x1d8   : > { %966 = vrot.lane.b32.xlu1 %v2065_v22, %s1683_s21  ;;  %972 = vrot.lane.b32.xlu0 %v2086_v42, %s1683_s21 }
 0x1dc   : > { %636 = vrot.lane.b32.xlu1 %v2097_v55, %s1682_s20  ;;  %642 = vrot.lane.b32.xlu0 %v2100_v50, %s1682_s20 }
 0x1de   : > { %v623_v51 = vpop.permute.xlu0 %622  ;;  %v2106_v52 = vpop.permute.xlu1 %703 }
 0x1e0   : > { %638 = vrot.lane.b32.xlu1 %v2076_v40, %s1682_s20  ;;  %575 = vrot.lane.b32.xlu0 %v544_v53, %s1687_s8 }
 0x1e2   : > { %v874_v54 = vpop.permute.xlu0 %873  ;;  %v2113_v56 = vpop.permute.xlu1 %954 }
 0x1e4   : > { %717 = vrot.lane.b32.xlu1 %v2097_v55, %s1681_s19  ;;  %725 = vrot.lane.b32.xlu0 %v2116_v57, %s1681_s19 }
 0x1e6   : > { %v1125_v58 = vpop.permute.xlu0 %1124  ;;  %v2122_v27 = vpop.permute.xlu1 %626 }
 0x1e8   : > { %887 = vrot.lane.b32.xlu1 %v2097_v55, %s1684_s22  ;;  %893 = vrot.lane.b32.xlu0 %v2100_v50, %s1684_s22 }
 0x1ea   : > { %v2128_v59 = vpop.permute.xlu0 %624  ;;  %v2130_v61 = vpop.permute.xlu1 %705 }
 0x1eb   : > { %v647_v44 = vsel %vm646_vm3, %v623_v51, %v2128_v59  ;;  %v1058_v51 = vmul.f32 %v1887_v31, %v2097_v55 }
 0x1ec   : > { %889 = vrot.lane.b32.xlu1 %v2076_v40, %s1684_s22  ;;  %838 = vrot.lane.b32.xlu0 %v807_v62, %s1688_s9 }
 0x1ee   : > { %v2139_v63 = vpop.permute.xlu0 %707  ;;  %v876_v0 = vpop.permute.xlu1 %875 }
 0x1ef   : > { %v2142_v1 = vsel %vm897_vm4, %v874_v54, %v876_v0  ;;  %v439_v54 = vand.u32 127, %v438_v47 }
 0x1f0   : > { %968 = vrot.lane.b32.xlu1 %v2097_v55, %s1683_s21  ;;  %976 = vrot.lane.b32.xlu0 %v2116_v57, %s1683_s21 }
 0x1f1   : > { %v445_v18 = vand.u32 15, %v439_v54 }
 0x1f2   : > { %v959_v46 = vpop.permute.xlu0 %958  ;;  %v878_v25 = vpop.permute.xlu1 %877 }
 0x1f3   : > { %v2149_v26 = vsel %vm897_vm4, %v876_v0, %v878_v25  ;;  %v546_v25 = vmul.f32 %v1915_v60, %v2086_v42  ;;  %vm2184_vm7 = vcmp.ge.s32.totalorder %v445_v18, 1  ;;  %vm2190_vm8 = vcmp.le.s32.totalorder %v445_v18, 14 }
 0x1f4   : > { %1138 = vrot.lane.b32.xlu1 %v2097_v55, %s1685_s23  ;;  %1144 = vrot.lane.b32.xlu0 %v2100_v50, %s1685_s23 }
 0x1f6   : > { %v2155_v48 = vpop.permute.xlu0 %709  ;;  %v957_v29 = vpop.permute.xlu1 %956 }
 0x1f7   : > { %v2160_v53 = vsel %vm978_vm5, %v957_v29, %v959_v46 }
 0x1f8   : > { %1140 = vrot.lane.b32.xlu1 %v2076_v40, %s1685_s23  ;;  %1089 = vrot.lane.b32.xlu0 %v1058_v51, %s1686_s29  ;;  %v543_v51 = vmul.f32 %v1881_v28, %v2065_v22 }
 0x1fa   : > { %v2165_v62 = vpop.permute.xlu0 %960  ;;  %v1127_v0 = vpop.permute.xlu1 %1126 }
 0x1fb   : > { %v2170_v24 = vsel %vm1148_vm6, %v1125_v58, %v1127_v0 }
 0x1fc   : > { %640 = vrot.lane.b32.xlu1 %v2086_v42, %s1682_s20  ;;  %579 = vrot.lane.b32.xlu0 %v546_v25, %s1687_s8 }
 0x1fe   : > { %v2175_v46 = vpop.permute.xlu0 %1075  ;;  %v1129_v47 = vpop.permute.xlu1 %1128 }
 0x1ff   : > { %v2182_v16 = vsel %vm1148_vm6, %v1127_v0, %v1129_v47  ;;  %v473_v47 = vsel %vm2184_vm7, %v1958_v23, 0.0 }
 0x200   : > { %573 = vrot.lane.b32.xlu1 %v543_v51, %s1687_s8  ;;  %842 = vrot.lane.b32.xlu0 %v809_v39, %s1688_s9  ;;  %v663_v39 = vsel %vm2190_vm8, %v647_v44, 0.0  ;;  %v505_v51 = vmul.f32 %v1919_v3, %v473_v47 }
 0x201   : > { %v687_v23 = vmul.f32 %v1925_v6, %v663_v39 }
 0x202   : > { %v631_v34 = vpop.permute.xlu0 %630  ;;  %v629_v14 = vpop.permute.xlu1 %628 }
 0x203   : > { %v2197_v0 = vsel %vm646_vm3, %v629_v14, %v631_v34  ;;  %v806_v14 = vmul.f32 %v1917_v2, %v2065_v22 }
 0x204   : > { %891 = vrot.lane.b32.xlu1 %v2086_v42, %s1684_s22  ;;  %581 = vrot.lane.b32.xlu0 %v547_v13, %s1687_s8  ;;  %v728_v13 = vsel %vm727_vm10, %v2106_v52, %v2130_v61  ;;  %v1061_v52 = vmul.f32 %v1923_v5, %v2100_v50 }
 0x206   : > { %v564_v18 = vpop.permute.xlu0 %563  ;;  %v562_v20 = vpop.permute.xlu1 %561 }
 0x207   : > { %v586_v43 = vsel %vm585_vm9, %v562_v20, %v564_v18  ;;  %v440_v20 = vadd.s32 128, %v439_v54 }
 0x208   : > { %v602_v55 = vadd.f32 %v586_v43, %v505_v51  ;;  %836 = vrot.lane.b32.xlu1 %v806_v14, %s1688_s9  ;;  %1136 = vrot.lane.b32.xlu0 %v2065_v22, %s1685_s23  ;;  %v744_v43 = vsel %vm2184_vm7, %v728_v13, 0.0 }
 0x209   : > { %v452_v14 = vand.u32 15, %v440_v20 }
 0x20a   : > { %v695_v44 = vadd.f32 %v687_v23, %v602_v55  ;;  %v2218_v47 = vpop.permute.xlu0 %713  ;;  %v880_v17 = vpop.permute.xlu1 %879  ;;  %v545_v55 = vmul.f32 %v1881_v28, %v2076_v40  ;;  %v768_v23 = vmul.f32 %v1927_v7, %v744_v43  ;;  %v914_v28 = vsel %vm2190_vm8, %v2142_v1, 0.0  ;;  %v1352_v1 = vld [vmem:[%s2775_s6] sm:$0xff] }
 0x20b   : > { %vm2252_vm12 = vcmp.ge.s32.totalorder %v452_v14, 1  ;;  %v938_v43 = vmul.f32 %v1895_v35, %v914_v28  ;;  %vm2263_vm13 = vcmp.le.s32.totalorder %v452_v14, 14 }
 0x20c   : > { %644 = vrot.lane.b32.xlu1 %v2116_v57, %s1682_s20  ;;  %844 = vrot.lane.b32.xlu0 %v810_v36, %s1688_s9  ;;  %v979_v36 = vsel %vm978_vm5, %v2113_v56, %v957_v29  ;;  %v776_v15 = vadd.f32 %v768_v23, %v695_v44  ;;  %v474_v14 = vsel %vm2252_vm12, %v1975_v38, 0.0  ;;  %v808_v38 = vmul.f32 %v1917_v2, %v2076_v40  ;;  %s271_s20 = scalar_lea.vmem [#allocation2], %s1483_s18 }
 0x20d   : > { %v995_v20 = vsel %vm2184_vm7, %v979_v36, 0.0 }
 0x20e   : > { %v2227_v39 = vpop.permute.xlu0 %881  ;;  %v825_v51 = vpop.permute.xlu1 %824 }
 0x20f   : > { %v2235_v54 = vsel %vm897_vm4, %v880_v17, %v2227_v39  ;;  %v1057_v17 = vmul.f32 %v1887_v31, %v2065_v22 }
 0x210   : > { %577 = vrot.lane.b32.xlu1 %v545_v55, %s1687_s8  ;;  %1095 = vrot.lane.b32.xlu0 %v1061_v52, %s1686_s29  ;;  %v1019_v52 = vmul.f32 %v1933_v10, %v995_v20 }
 0x212   : > { %v827_v13 = vpop.permute.xlu0 %826  ;;  %v2245_v33 = vpop.permute.xlu1 %1130 }
 0x213   : > { %v849_v56 = vsel %vm848_vm11, %v825_v51, %v827_v13  ;;  %v648_v51 = vsel %vm646_vm3, %v2128_v59, %v2122_v27 }
 0x214   : > { %v865_v55 = vadd.f32 %v849_v56, %v776_v15  ;;  %723 = vrot.lane.b32.xlu1 %v2100_v50, %s1681_s19  ;;  %1087 = vrot.lane.b32.xlu0 %v1057_v17, %s1686_s29  ;;  %v729_v17 = vsel %vm727_vm10, %v2130_v61, %v2139_v63  ;;  %v664_v59 = vsel %vm2263_vm13, %v648_v51, 0.0  ;;  %s1500_s19 = sshll.u32 %s1751_s28, 8  ;;  %s1406_s28 = scalar_lea.sflag [#allocation3], %s269_s17 }
 0x215   : > { %v688_v63 = vmul.f32 %v1925_v6, %v664_v59 }
 0x216   : > { %v946_v15 = vadd.f32 %v938_v43, %v865_v55  ;;  %v2271_v23 = vpop.permute.xlu0 %964  ;;  %v633_v36 = vpop.permute.xlu1 %632  ;;  %v745_v43 = vsel %vm2252_vm12, %v729_v17, 0.0 }
 0x217   : > { %v2274_v28 = vsel %vm646_vm3, %v631_v34, %v633_v36  ;;  %v506_v34 = vmul.f32 %v1919_v3, %v474_v14  ;;  %v769_v3 = vmul.f32 %v1927_v7, %v745_v43  ;;  %v996_v43 = vsel %vm2252_vm12, %v2160_v53, 0.0 }
 0x218   : > { %895 = vrot.lane.b32.xlu1 %v2116_v57, %s1684_s22  ;;  %1355 = vperm.xlu0 %1584, %v1352_v1   ;;  %v1027_v27 = vadd.f32 %v1019_v52, %v946_v15  ;;  %v1165_v1 = vsel %vm2190_vm8, %v2170_v24, 0.0 }
 0x21a   : > { %v2286_v20 = vpop.permute.xlu0 %1132  ;;  %v566_v56 = vpop.permute.xlu1 %565 }
 0x21b   : > { %v587_v61 = vsel %vm585_vm9, %v564_v18, %v566_v56  ;;  %v1189_v18 = vmul.f32 %v1903_v41, %v1165_v1  ;;  %v475_v56 = vsel %vm2184_vm7, %v1987_v45, 0.0  ;;  %v1020_v45 = vmul.f32 %v1933_v10, %v996_v43 }
 0x21c   : > { %v603_v55 = vadd.f32 %v587_v61, %v506_v34  ;;  %840 = vrot.lane.b32.xlu1 %v808_v38, %s1688_s9 }
 0x21e   : > { %v696_v51 = vadd.f32 %v688_v63, %v603_v55  ;;  %v1078_v52 = vpop.permute.xlu0 %1077  ;;  %v2300_v2 = vpop.permute.xlu1 %711 }
 0x21f   : > { %v1100_v15 = vsel %vm1099_vm14, %v2175_v46, %v1078_v52  ;;  %v730_v6 = vsel %vm727_vm10, %v2155_v48, %v2300_v2  ;;  %v915_v46 = vsel %vm2263_vm13, %v2149_v26, 0.0  ;;  %v665_v26 = vsel %vm2190_vm8, %v2197_v0, 0.0 }
 0x220   : > { %v1116_v36 = vadd.f32 %v1100_v15, %v1027_v27  ;;  %974 = vrot.lane.b32.xlu1 %v2100_v50, %s1683_s21  ;;  %v777_v24 = vadd.f32 %v769_v3, %v696_v51  ;;  %v1059_v27 = vmul.f32 %v1887_v31, %v2076_v40  ;;  %v939_v38 = vmul.f32 %v1895_v35, %v915_v46  ;;  %s1420_s21 = sshll.u32 %s271_s20, 4  ;;  %s2729_s21 = int_to_ptr.vmem [resolvable:$true] %s1420_s21 }
 0x221   : > { %v507_v40 = vmul.f32 %v1921_v4, %v475_v56  ;;  %v548_v35 = vmul.f32 %v1915_v60, %v2116_v57  ;;  %v746_v53 = vsel %vm2184_vm7, %v730_v6, 0.0  ;;  %v689_v1 = vmul.f32 %v1889_v32, %v665_v26 }
 0x222   : > { %v1197_v14 = vadd.f32 %v1189_v18, %v1116_v36  ;;  %v568_v7 = vpop.permute.xlu0 %567  ;;  %v2310_v17 = vpop.permute.xlu1 %883  ;;  %v770_v15 = vmul.f32 %v1929_v8, %v746_v53  ;;  %v916_v6 = vsel %vm2190_vm8, %v2235_v54, 0.0  ;;  %v811_v56 = vmul.f32 %v1885_v30, %v2116_v57 }
 0x223   : > { %v940_v46 = vmul.f32 %v1931_v9, %v916_v6 }
 0x224   : > { %1146 = vrot.lane.b32.xlu1 %v2116_v57, %s1685_s23 }
 0x226   : > { %v831_v59 = vpop.permute.xlu0 %830  ;;  %v829_v48 = vpop.permute.xlu1 %828 }
 0x227   : > { %v850_v34 = vsel %vm848_vm11, %v827_v13, %v829_v48  ;;  %v1151_v48 = vsel %vm1148_vm6, %v2245_v33, %v2286_v20 }
 0x228   : > { %v866_v61 = vadd.f32 %v850_v34, %v777_v24  ;;  %1091 = vrot.lane.b32.xlu1 %v1059_v27, %s1686_s29  ;;  %v1167_v33 = vsel %vm2190_vm8, %v1151_v48, 0.0 }
 0x229   : > { %v1191_v53 = vmul.f32 %v1935_v11, %v1167_v33 }
 0x22a   : > { %v947_v31 = vadd.f32 %v939_v38, %v866_v61  ;;  %v570_v13 = vpop.permute.xlu0 %569  ;;  %v2332_v63 = vpop.permute.xlu1 %962  ;;  %v2364_v38 = vadd.f32 %v1937_v12, %v1197_v14  ;;  %v1062_v14 = vmul.f32 %v1923_v5, %v2116_v57  ;;  %v666_v57 = vsel %vm2263_vm13, %v2274_v28, 0.0 }
 0x22b   : > { %v588_v55 = vsel %vm585_vm9, %v568_v7, %v570_v13  ;;  %v981_v0 = vsel %vm978_vm5, %v2165_v62, %v2332_v63  ;;  %v1166_v62 = vsel %vm2263_vm13, %v2182_v16, 0.0  ;;  %v690_v6 = vmul.f32 %v1889_v32, %v666_v57 }
 0x22c   : > { %v604_v3 = vadd.f32 %v588_v55, %v507_v40  ;;  %583 = vrot.lane.b32.xlu1 %v548_v35, %s1687_s8  ;;  %v1028_v51 = vadd.f32 %v1020_v45, %v947_v31  ;;  %v997_v24 = vsel %vm2184_vm7, %v981_v0, 0.0  ;;  %v1190_v43 = vmul.f32 %v1903_v41, %v1166_v62  ;;  %s1607_s8 = scalar_lea.vmem %s2729_s21, 256 }
 0x22d   : > { %v476_v45 = vsel %vm2252_vm12, %v2002_v49, 0.0  ;;  %v731_v55 = vsel %vm727_vm10, %v2300_v2, %v2218_v47  ;;  %v1060_v49 = vmul.f32 %v1923_v5, %v2086_v42  ;;  %p1608_p11 = scmp.ne.s32.totalorder %s2729_s21, %s1607_s8 }
 0x22e   : > { %v697_v60 = vadd.f32 %v689_v1, %v604_v3  ;;  %v833_v18 = vpop.permute.xlu0 %832  ;;  %v1135_v10 = vpop.permute.xlu1 %1134  ;;  %v747_v47 = vsel %vm2252_vm12, %v731_v55, 0.0 }
 0x22f   : > { %v851_v7 = vsel %vm848_vm11, %v831_v59, %v833_v18  ;;  %v1021_v59 = vmul.f32 %v1899_v37, %v997_v24  ;;  %p1609_p12 = pnand %p1608_p11, %p1768_p5 }
 0x230   : > { %v778_v36 = vadd.f32 %v770_v15, %v697_v60  ;;  %1142 = vrot.lane.b32.xlu1 %v2086_v42, %s1685_s23 }
 0x231   : > { %p1610_p13 = pneg %p1609_p12 }
 0x232   : > { %v867_v54 = vadd.f32 %v851_v7, %v778_v36  ;;  %v1084_v27 = vpop.permute.xlu0 %1083  ;;  %v1080_v34 = vpop.permute.xlu1 %1079  ;;  %v771_v36 = vmul.f32 %v1929_v8, %v747_v47 }
 0x233   : > { %v1101_v16 = vsel %vm1099_vm14, %v1078_v52, %v1080_v34  ;;  %v2375_v52 = vmul.f32 0.70710677, %v2364_v38 }
 0x234   : > { %v948_v61 = vadd.f32 %v940_v46, %v867_v54  ;;  %v1117_v26 = vadd.f32 %v1101_v16, %v1028_v51  ;;  %846 = vrot.lane.b32.xlu1 %v811_v56, %s1688_s9  ;;  %v508_v51 = vmul.f32 %v1921_v4, %v476_v45  ;;  %v901_v4 = vsel %vm897_vm4, %v2227_v39, %v2310_v17  ;;  %s1689_s9 = smov [#allocation2]  }
 0x235   : > { %v2395_v60 = vand.u32 2147483647, %v2375_v52  ;;  %v917_v32 = vsel %vm2263_vm13, %v901_v4, 0.0  ;;  %v1152_v56 = vsel %vm1148_vm6, %v2286_v20, %v1135_v10  ;;  %vm1325_vm15 = vcmp.ge.f32.partialorder %v2375_v52, 0.0  ;;  %s1611_s13 = sshll.u32 %s1689_s9, 4  ;;  %s1612_s13 = int_to_ptr.vmem [resolvable:$false] %s1611_s13 }
 0x236   : > { %v1198_v31 = vadd.f32 %v1190_v43, %v1117_v26  ;;  %v635_v40 = vpop.permute.xlu0 %634  ;;  %v1029_v35 = vadd.f32 %v1021_v59, %v948_v61  ;;  %v1082_v30 = vpop.permute.xlu1 %1081  ;;  %v941_v34 = vmul.f32 %v1931_v9, %v917_v32  ;;  %v1168_v43 = vsel %vm2263_vm13, %v1152_v56, 0.0  ;;  %s1613_s14 = scalar_lea.vmem %s1612_s13, 512  ;;  %p1614_p0 = scmp.lt.s32.totalorder %s2729_s21, %s1612_s13 }
 0x237   : > { %v1102_v41 = vsel %vm1099_vm14, %v1082_v30, %v1084_v27  ;;  %v1249_v7 = vmul.f32 0.3275911, %v2395_v60  ;;  %v1192_v33 = vmul.f32 %v1935_v11, %v1168_v43  ;;  %p1615_p1 = scmp.lt.s32.totalorder %s1613_s14, %s1607_s8 }
 0x238   : > { %v1118_v0 = vadd.f32 %v1102_v41, %v1029_v35  ;;  %1097 = vrot.lane.b32.xlu1 %v1062_v14, %s1686_s29 }
 0x239   : > { %v1253_v54 = vadd.f32 1.0, %v1249_v7  ;;  %p1616_p2 = por %p1615_p1, %p1614_p0 }
 0x23a   : > { %v1199_v1 = vadd.f32 %v1191_v53, %v1118_v0  ;;  %v2389_v3 = vpop.permute.xlu0 %885  ;;  %v572_v15 = vpop.permute.xlu1 %571 }
 0x23b   : > { %v589_v2 = vsel %vm585_vm9, %v570_v13, %v572_v15  ;;  %v982_v13 = vsel %vm978_vm5, %v2332_v63, %v2271_v23  ;;  %1591 = vrcp.f32 %v1253_v54  ;;  %p1617_p3 = pnand %p1616_p2, %p1610_p13 }
 0x23c   : > { %v605_v28 = vadd.f32 %v589_v2, %v508_v51  ;;  %1093 = vrot.lane.b32.xlu1 %v1060_v49, %s1686_s29  ;;  %v998_v48 = vsel %vm2252_vm12, %v982_v13, 0.0  ;;  %s2727_s29 = scalar_lea.hbm %s2776_s7, %s1500_s19 }
 0x23d   : > { %v1022_v23 = vmul.f32 %v1899_v37, %v998_v48 }
 0x23e   : > { %v698_v5 = vadd.f32 %v690_v6, %v605_v28  ;;  %v2406_v62 = vpop.permute.xlu0 %719  ;;  %v835_v24 = vpop.permute.xlu1 %834  ;;  %v2466_v28 = vadd.f32 %v1951_v19, %v1199_v1 }
 0x23f   : > { %v852_v39 = vsel %vm848_vm11, %v833_v18, %v835_v24  ;;  %v2428_v18 = vadd.f32 %v1937_v12, %v1198_v31 }
 0x240   : > { %v779_v46 = vadd.f32 %v771_v36, %v698_v5  ;;  %2821 = vst [vmem:[#allocation20_spill] sm:$0xff] %v2466_v28  ;;  %v2479_v13 = vmul.f32 0.70710677, %v2466_v28  ;;  %v2828_v28 = vld [vmem:[#allocation14_spill] sm:$0xff] }
 0x241   : > { %v2435_v35 = vmul.f32 0.70710677, %v2428_v18 }
 0x242   : > { %v2417_v8 = vpop.permute.xlu0 %970  ;;  %v1086_v17 = vpop.permute.xlu1 %1085  ;;  %v868_v16 = vadd.f32 %v852_v39, %v779_v46  ;;  %2823 = vst [vmem:[#allocation22_spill] sm:$0xff] %v2479_v13  ;;  %v2493_v39 = vand.u32 2147483647, %v2479_v13 }
 0x243   : > { %v1103_v9 = vsel %vm1099_vm14, %v1084_v27, %v1086_v17  ;;  %v2440_v45 = vand.u32 2147483647, %v2435_v35  ;;  %vm1326_vm0 = vcmp.ge.f32.partialorder %v2435_v35, 0.0 }
 0x244   : > { %v949_v63 = vadd.f32 %v941_v34, %v868_v16  ;;  %v1251_v43 = vmul.f32 0.3275911, %v2493_v39 }
 0x245   : > { %v2445_v27 = vpop.eup %1591  ;;  %v1250_v53 = vmul.f32 0.3275911, %v2440_v45 }
 0x246   : > { %v2425_v59 = vpop.permute.xlu0 %721  ;;  %v716_v61 = vpop.permute.xlu1 %715  ;;  %v1030_v26 = vadd.f32 %v1022_v23, %v949_v63  ;;  %v1265_v0 = vmul.f32 1.0614054, %v2445_v27 }
 0x247   : > { %v1254_v15 = vadd.f32 1.0, %v1250_v53 }
 0x248   : > { %v1119_v20 = vadd.f32 %v1103_v9, %v1030_v26  ;;  %v1269_v47 = vadd.f32 -1.4531521, %v1265_v0 }
 0x249   : > { %1593 = vrcp.f32 %v1254_v15  ;;  %v477_v15 = vsel %vm2184_vm7, %v2065_v22, 0.0  ;;  %v2825_v22 = vld [vmem:[#allocation5_spill] sm:$0xff] }
 0x24a   : > { %v2432_v10 = vpop.permute.xlu0 %972  ;;  %v967_v37 = vpop.permute.xlu1 %966  ;;  %v1200_v30 = vadd.f32 %v1192_v33, %v1119_v20  ;;  %v1273_v5 = vmul.f32 %v2445_v27, %v1269_v47 }
 0x24c   : > { %v2461_v49 = vadd.f32 %v1951_v19, %v1200_v30  ;;  %v1277_v1 = vadd.f32 1.4214138, %v1273_v5 }
 0x24e   : > { %v2437_v14 = vpop.permute.xlu0 %642  ;;  %v637_v41 = vpop.permute.xlu1 %636  ;;  %2820 = vst [vmem:[#allocation19_spill] sm:$0xff] %v2461_v49  ;;  %v2473_v36 = vmul.f32 0.70710677, %v2461_v49  ;;  %v1281_v34 = vmul.f32 %v2445_v27, %v1277_v1  ;;  %v509_v1 = vmul.f32 %v1955_v21, %v477_v15 }
 0x24f   : > { %v2443_v12 = vsel %vm646_vm3, %v635_v40, %v637_v41 }
 0x250   : > { %2822 = vst [vmem:[#allocation21_spill] sm:$0xff] %v2473_v36  ;;  %v2485_v19 = vand.u32 2147483647, %v2473_v36  ;;  %v1285_v9 = vadd.f32 -0.28449672, %v1281_v34  ;;  %v667_v5 = vsel %vm2190_vm8, %v2443_v12, 0.0 }
 0x252   : > { %v2447_v11 = vpop.permute.xlu0 %575  ;;  %v639_v31 = vpop.permute.xlu1 %638  ;;  %v1252_v54 = vmul.f32 0.3275911, %v2485_v19 }
 0x253   : > { %v2451_v55 = vsel %vm646_vm3, %v637_v41, %v639_v31  ;;  %v2499_v56 = vpop.eup %1593  ;;  %v1255_v41 = vadd.f32 1.0, %v1251_v43  ;;  %v1289_v31 = vmul.f32 %v2445_v27, %v1285_v9  ;;  %v1302_v9 = vsub.f32 0.0, %v2440_v45 }
 0x254   : > { %v1266_v26 = vmul.f32 1.0614054, %v2499_v56 }
 0x256   : > { %v2454_v57 = vpop.permute.xlu0 %725  ;;  %v2456_v51 = vpop.permute.xlu1 %717 }
 0x257   : > { %v732_v40 = vsel %vm727_vm10, %v716_v61, %v2456_v51  ;;  %v1256_v61 = vadd.f32 1.0, %v1252_v54 }
 0x258   : > { %v748_v54 = vsel %vm2184_vm7, %v732_v40, 0.0 }
 0x259   : > { %1595 = vrcp.f32 %v1256_v61 }
 0x25a   : > { %v2463_v2 = vpop.permute.xlu0 %893  ;;  %v888_v6 = vpop.permute.xlu1 %887 }
 0x25b   : > { %v2470_v4 = vsel %vm897_vm4, %v2389_v3, %v888_v6  ;;  %v1301_v3 = vsub.f32 0.0, %v2395_v60 }
 0x25d   : > { %v1305_v16 = vmul.f32 %v1301_v3, %v2395_v60  ;;  %v1270_v60 = vadd.f32 -1.4531521, %v1266_v26 }
 0x25e   : > { %v2476_v24 = vpop.permute.xlu0 %838  ;;  %v890_v7 = vpop.permute.xlu1 %889 }
 0x25f   : > { %v2482_v32 = vsel %vm897_vm4, %v888_v6, %v890_v7  ;;  %v1309_v33 = vmul.f32 1.442695, %v1305_v16  ;;  %v1274_v47 = vmul.f32 %v2499_v56, %v1270_v60  ;;  %v1293_v6 = vadd.f32 0.2548296, %v1289_v31 }
 0x260   : > { %v691_v16 = vmul.f32 %v2825_v22, %v667_v5 }
 0x261   : > { %1597 = vpow2.f32 %v1309_v33  ;;  %v1278_v61 = vadd.f32 1.4214138, %v1274_v47  ;;  %v1297_v26 = vmul.f32 %v2445_v27, %v1293_v6  ;;  %v2826_v33 = vld [vmem:[#allocation12_spill] sm:$0xff]  ;;  %v1306_v47 = vmul.f32 %v1302_v9, %v2440_v45 }
 0x262   : > { %v2488_v46 = vpop.permute.xlu0 %976  ;;  %v2490_v48 = vpop.permute.xlu1 %968  ;;  %1599 = vrcp.f32 %v1255_v41  ;;  %v918_v27 = vsel %vm2190_vm8, %v2470_v4, 0.0 }
 0x263   : > { %v983_v17 = vsel %vm978_vm5, %v967_v37, %v2490_v48  ;;  %v2536_v12 = vpop.eup %1595 }
 0x264   : > { %v1268_v6 = vmul.f32 1.0614054, %v2536_v12 }
 0x266   : > { %v2502_v23 = vpop.permute.xlu0 %1144  ;;  %v2504_v63 = vpop.permute.xlu1 %1138 }
 0x267   : > { %2824 = vst [vmem:[#allocation23_spill] sm:$0xff] %v2502_v23 }
 0x26a   : > { %v2508_v20 = vpop.permute.xlu0 %1089  ;;  %v1141_v37 = vpop.permute.xlu1 %1140 }
 0x26b   : > { %v2512_v30 = vsel %vm1148_vm6, %v2504_v63, %v1141_v37  ;;  %v772_v37 = vmul.f32 %v2826_v33, %v748_v54  ;;  %v1598_v40 = vpop.eup %1597 }
 0x26c   : > { %v1317_v5 = vmul.f32 %v1598_v40, %v1297_v26  ;;  %v1272_v40 = vadd.f32 -1.4531521, %v1268_v6 }
 0x26e   : > { %v2515_v53 = vpop.permute.xlu0 %579  ;;  %v2517_v0 = vpop.permute.xlu1 %640  ;;  %v1321_v9 = vsub.f32 1.0, %v1317_v5  ;;  %v1276_v6 = vmul.f32 %v2536_v12, %v1272_v40  ;;  %v1304_v40 = vsub.f32 0.0, %v2485_v19 }
 0x272   : > { %v2526_v7 = vpop.permute.xlu0 %842  ;;  %v574_v3 = vpop.permute.xlu1 %573 }
 0x273   : > { %v590_v34 = vsel %vm585_vm9, %v574_v3, %v2447_v11  ;;  %v1282_v3 = vmul.f32 %v2499_v56, %v1278_v61  ;;  %v2827_v61 = vld [vmem:[#allocation7_spill] sm:$0xff] }
 0x274   : > { %v606_v43 = vadd.f32 %v590_v34, %v509_v1  ;;  %v2549_v1 = vpop.eup %1599  ;;  %v942_v26 = vmul.f32 %v2827_v61, %v918_v27  ;;  %v668_v27 = vsel %vm2263_vm13, %v2451_v55, 0.0 }
 0x275   : > { %v1286_v45 = vadd.f32 -0.28449672, %v1282_v3  ;;  %v1267_v4 = vmul.f32 1.0614054, %v2549_v1  ;;  %v692_v55 = vmul.f32 %v2825_v22, %v668_v27 }
 0x276   : > { %v699_v41 = vadd.f32 %v691_v16, %v606_v43  ;;  %v2539_v60 = vpop.permute.xlu0 %581  ;;  %v2541_v31 = vpop.permute.xlu1 %891  ;;  %v999_v16 = vsel %vm2184_vm7, %v983_v17, 0.0  ;;  %v2829_v17 = vld [vmem:[#allocation18_spill] sm:$0xff] }
 0x277   : > { %v1023_v49 = vmul.f32 %v2828_v28, %v999_v16  ;;  %v1290_v5 = vmul.f32 %v2499_v56, %v1286_v45  ;;  %v1271_v16 = vadd.f32 -1.4531521, %v1267_v4 }
 0x278   : > { %v780_v15 = vadd.f32 %v772_v37, %v699_v41  ;;  %v1311_v41 = vmul.f32 1.442695, %v1306_v47  ;;  %v1329_v47 = vsub.f32 0.0, %v1321_v9 }
 0x279   : > { %v1294_v45 = vadd.f32 0.2548296, %v1290_v5 }
 0x27a   : > { %v1137_v54 = vpop.permute.xlu0 %1136  ;;  %v837_v34 = vpop.permute.xlu1 %836  ;;  %1601 = vpow2.f32 %v1311_v41  ;;  %v1333_v41 = vsel %vm1325_vm15, %v1321_v9, %v1329_v47 }
 0x27b   : > { %v853_v43 = vsel %vm848_vm11, %v837_v34, %v2476_v24  ;;  %v478_v34 = vsel %vm2252_vm12, %v2829_v17, 0.0  ;;  %v1337_v22 = vadd.f32 1.0, %v1333_v41  ;;  %v1298_v27 = vmul.f32 %v2499_v56, %v1294_v45 }
 0x27c   : > { %v869_v37 = vadd.f32 %v853_v43, %v780_v15  ;;  %v733_v15 = vsel %vm727_vm10, %v2456_v51, %v2406_v62  ;;  %v1153_v43 = vsel %vm1148_vm6, %v1137_v54, %v2504_v63  ;;  %v1280_v54 = vadd.f32 1.4214138, %v1276_v6 }
 0x27d   : > { %v749_v51 = vsel %vm2252_vm12, %v733_v15, 0.0  ;;  %v1169_v63 = vsel %vm2190_vm8, %v1153_v43, 0.0  ;;  %v2830_v15 = vld [vmem:[#allocation9_spill] sm:$0xff]  ;;  %v1303_v43 = vsub.f32 0.0, %v2493_v39  ;;  %v919_v41 = vsel %vm2263_vm13, %v2482_v32, 0.0 }
 0x27e   : > { %v950_v13 = vadd.f32 %v942_v26, %v869_v37  ;;  %v2558_v36 = vpop.permute.xlu0 %844  ;;  %v2560_v23 = vpop.permute.xlu1 %644  ;;  %v510_v37 = vmul.f32 %v1955_v21, %v478_v34  ;;  %v1275_v21 = vmul.f32 %v2549_v1, %v1271_v16  ;;  %v773_v4 = vmul.f32 %v2826_v33, %v749_v51 }
 0x27f   : > { %v1193_v9 = vmul.f32 %v2830_v15, %v1169_v63  ;;  %v1284_v6 = vmul.f32 %v2536_v12, %v1280_v54  ;;  %v1308_v33 = vmul.f32 %v1304_v40, %v2485_v19  ;;  %v1237_v51 = vmul.f32 0.5, %v2364_v38 }
 0x280   : > { %v1031_v3 = vadd.f32 %v1023_v49, %v950_v13  ;;  %v1279_v16 = vadd.f32 1.4214138, %v1275_v21  ;;  %v1307_v54 = vmul.f32 %v1303_v43, %v2493_v39  ;;  %v654_v35 = vsel %vm646_vm3, %v2437_v14, %v2560_v23 }
 0x281   : > { %v1341_v45 = vmul.f32 %v1337_v22, %v1237_v51  ;;  %v1288_v63 = vadd.f32 -0.28449672, %v1284_v6  ;;  %v1315_v21 = vmul.f32 1.442695, %v1308_v33  ;;  %v653_v33 = vsel %vm646_vm3, %v2517_v0, %v2437_v14 }
 0x282   : > { %v2575_v26 = vpop.permute.xlu0 %1095  ;;  %v578_v62 = vpop.permute.xlu1 %577  ;;  %v1283_v19 = vmul.f32 %v2549_v1, %v1279_v16  ;;  %v1313_v22 = vmul.f32 1.442695, %v1307_v54  ;;  %v592_v0 = vsel %vm585_vm9, %v2515_v53, %v2539_v60  ;;  %vm1358_vm3 = vcmask 130048  }
 0x283   : > { %v591_v49 = vsel %vm585_vm9, %v2447_v11, %v578_v62  ;;  %v1292_v32 = vmul.f32 %v2536_v12, %v1288_v63  ;;  %1603 = vpow2.f32 %v1315_v21 }
 0x284   : > { %v607_v13 = vadd.f32 %v591_v49, %v510_v37  ;;  %v1602_v49 = vpop.eup %1601  ;;  %1605 = vpow2.f32 %v1313_v22 }
 0x285   : > { %v1296_v16 = vadd.f32 0.2548296, %v1292_v32  ;;  %v2834_v32 = vld [vmem:[#allocation6_spill] sm:$0xff] }
 0x286   : > { %v700_v17 = vadd.f32 %v692_v55, %v607_v13  ;;  %v1088_v34 = vpop.permute.xlu0 %1087  ;;  %v2589_v11 = vpop.permute.xlu1 %723  ;;  %v1318_v55 = vmul.f32 %v1602_v49, %v1298_v27  ;;  %v2831_v13 = vld [vmem:[#allocation16_spill] sm:$0xff] }
 0x287   : > { %v1104_v52 = vsel %vm1099_vm14, %v1088_v34, %v2508_v20 }
 0x288   : > { %v1120_v5 = vadd.f32 %v1104_v52, %v1031_v3  ;;  %v781_v47 = vadd.f32 %v773_v4, %v700_v17  ;;  %v984_v3 = vsel %vm978_vm5, %v2490_v48, %v2417_v8  ;;  %v943_v4 = vmul.f32 %v2827_v61, %v919_v41 }
 0x289   : > { %v1000_v8 = vsel %vm2252_vm12, %v984_v3, 0.0  ;;  %v1322_v34 = vsub.f32 1.0, %v1318_v55  ;;  %v1287_v52 = vadd.f32 -0.28449672, %v1283_v19  ;;  %v479_v61 = vsel %vm2184_vm7, %v2086_v42, 0.0  ;;  %v2832_v3 = vld [vmem:[#allocation10_spill] sm:$0xff] }
 0x28a   : > { %v1201_v37 = vadd.f32 %v1193_v9, %v1120_v5  ;;  %v2598_v62 = vpop.permute.xlu1 %895  ;;  %v1024_v39 = vmul.f32 %v2828_v28, %v1000_v8  ;;  %v1170_v28 = vsel %vm2263_vm13, %v2512_v30, 0.0  ;;  %v734_v42 = vsel %vm727_vm10, %v2425_v59, %v2589_v11  ;;  %v2833_v8 = vld [vmem:[#allocation11_spill] sm:$0xff] }
 0x28b   : > { %v1330_v6 = vsub.f32 0.0, %v1322_v34  ;;  %v1291_v43 = vmul.f32 %v2549_v1, %v1287_v52  ;;  %v480_v30 = vsel %vm2252_vm12, %v2100_v50, 0.0  ;;  %v511_v55 = vmul.f32 %v2832_v3, %v479_v61 }
 0x28c   : > { %v1233_v56 = vadd.f32 %v2831_v13, %v1201_v37  ;;  %v1300_v37 = vmul.f32 %v2536_v12, %v1296_v16  ;;  %v1194_v23 = vmul.f32 %v2830_v15, %v1170_v28  ;;  %v669_v59 = vsel %vm2190_vm8, %v653_v33, 0.0 }
 0x28d   : > { %v1295_v51 = vadd.f32 0.2548296, %v1291_v43  ;;  %v1604_v14 = vpop.eup %1603  ;;  %v1238_v41 = vmul.f32 0.5, %v2428_v18  ;;  %v670_v50 = vsel %vm2263_vm13, %v654_v35, 0.0  ;;  %v750_v63 = vsel %vm2184_vm7, %v734_v42, 0.0 }
 0x28e   : > { %v841_v38 = vpop.permute.xlu1 %840  ;;  %v2610_v40 = vmul.f32 %v1341_v45, %v1233_v56  ;;  %v1320_v53 = vmul.f32 %v1604_v14, %v1300_v37  ;;  %v735_v15 = vsel %vm727_vm10, %v2589_v11, %v2454_v57  ;;  %v512_v21 = vmul.f32 %v2832_v3, %v480_v30  ;;  %v2836_v3 = vld [vmem:[#allocation23_spill] sm:$0xff] }
 0x28f   : > { %v854_v48 = vsel %vm848_vm11, %v2476_v24, %v841_v38  ;;  %v1299_v19 = vmul.f32 %v2549_v1, %v1295_v51  ;;  %v693_v18 = vmul.f32 %v2833_v8, %v669_v59  ;;  %v774_v1 = vmul.f32 %v2834_v32, %v750_v63  ;;  %v2839_v63 = vld [vmem:[#allocation22_spill] sm:$0xff] }
 0x290   : > { %v870_v17 = vadd.f32 %v854_v48, %v781_v47  ;;  %v1334_v47 = vsel %vm1326_vm0, %v1322_v34, %v1330_v6  ;;  %v694_v34 = vmul.f32 %v2833_v8, %v670_v50  ;;  %v751_v57 = vsel %vm2252_vm12, %v735_v15, 0.0  ;;  %v2840_v15 = vld [vmem:[#allocation15_spill] sm:$0xff] }
 0x291   : > { %v1338_v56 = vadd.f32 1.0, %v1334_v47  ;;  %v1324_v11 = vsub.f32 1.0, %v1320_v53  ;;  %v904_v43 = vsel %vm897_vm4, %v2541_v31, %v2463_v2  ;;  %v775_v61 = vmul.f32 %v2834_v32, %v751_v57 }
 0x292   : > { %v951_v9 = vadd.f32 %v943_v4, %v870_v17  ;;  %v975_v5 = vpop.permute.xlu1 %974  ;;  %v1606_v17 = vpop.eup %1605  ;;  %v920_v37 = vsel %vm2190_vm8, %v904_v43, 0.0  ;;  %vm1327_vm2 = vcmp.ge.f32.partialorder %v2839_v63, 0.0 }
 0x293   : > { %v1342_v4 = vmul.f32 %v1338_v56, %v1238_v41  ;;  %v985_v47 = vsel %vm978_vm5, %v2432_v10, %v975_v5  ;;  %v986_v28 = vsel %vm978_vm5, %v975_v5, %v2488_v46  ;;  %v1332_v42 = vsub.f32 0.0, %v1324_v11  ;;  %v2838_v56 = vld [vmem:[#allocation8_spill] sm:$0xff] }
 0x294   : > { %v1032_v27 = vadd.f32 %v1024_v39, %v951_v9  ;;  %v1319_v39 = vmul.f32 %v1606_v17, %v1299_v19  ;;  %v1001_v10 = vsel %vm2184_vm7, %v985_v47, 0.0  ;;  %v1002_v46 = vsel %vm2252_vm12, %v986_v28, 0.0 }
 0x295   : > { %v1025_v14 = vmul.f32 %v2838_v56, %v1001_v10  ;;  %v1026_v29 = vmul.f32 %v2838_v56, %v1002_v46 }
 0x296   : > { %v2620_v24 = vpop.permute.xlu1 %1146 }
 0x29a   : > { %v1092_v49 = vpop.permute.xlu1 %1091 }
 0x29b   : > { %v1105_v12 = vsel %vm1099_vm14, %v2508_v20, %v1092_v49  ;;  %v608_v20 = vadd.f32 %v592_v0, %v511_v55  ;;  %v2835_v49 = vld [vmem:[#allocation13_spill] sm:$0xff]  ;;  %v1156_v55 = vsel %vm1148_vm6, %v2836_v3, %v2620_v24 }
 0x29c   : > { %v1121_v45 = vadd.f32 %v1105_v12, %v1032_v27  ;;  %v905_v27 = vsel %vm897_vm4, %v2463_v2, %v2598_v62  ;;  %v1323_v62 = vsub.f32 1.0, %v1319_v39  ;;  %v855_v2 = vsel %vm848_vm11, %v2526_v7, %v2558_v36  ;;  %v2837_v7 = vld [vmem:[#allocation21_spill] sm:$0xff] }
 0x29d   : > { %v701_v9 = vadd.f32 %v693_v18, %v608_v20  ;;  %v921_v33 = vsel %vm2263_vm13, %v905_v27, 0.0  ;;  %v944_v12 = vmul.f32 %v2835_v49, %v920_v37  ;;  %vm1328_vm1 = vcmp.ge.f32.partialorder %v2837_v7, 0.0 }
 0x29e   : > { %v1202_v54 = vadd.f32 %v1194_v23, %v1121_v45  ;;  %v584_v38 = vpop.permute.xlu1 %583  ;;  %v945_v30 = vmul.f32 %v2835_v49, %v921_v33  ;;  %v1331_v58 = vsub.f32 0.0, %v1323_v62  ;;  %v1172_v45 = vsel %vm2263_vm13, %v1156_v55, 0.0 }
 0x29f   : > { %v593_v48 = vsel %vm585_vm9, %v2539_v60, %v584_v38  ;;  %v1336_v41 = vsel %vm1328_vm1, %v1324_v11, %v1332_v42  ;;  %v2843_v11 = vld [vmem:[#allocation20_spill] sm:$0xff] }
 0x2a0   : > { %v609_v52 = vadd.f32 %v593_v48, %v512_v21  ;;  %v1234_v22 = vadd.f32 %v2831_v13, %v1202_v54  ;;  %v782_v13 = vadd.f32 %v774_v1, %v701_v9  ;;  %v1335_v20 = vsel %vm1327_vm2, %v1323_v62, %v1331_v58  ;;  %v2841_v48 = vld [vmem:[#allocation19_spill] sm:$0xff] }
 0x2a1   : > { %v1196_v54 = vmul.f32 %v2840_v15, %v1172_v45  ;;  %v1340_v18 = vadd.f32 1.0, %v1336_v41  ;;  %v1339_v32 = vadd.f32 1.0, %v1335_v20  ;;  %v1239_v39 = vmul.f32 0.5, %v2843_v11 }
 0x2a2   : > { %v702_v60 = vadd.f32 %v694_v34, %v609_v52  ;;  %v1143_v6 = vpop.permute.xlu1 %1142  ;;  %v1346_v16 = vmul.f32 %v1342_v4, %v1234_v22  ;;  %v871_v5 = vadd.f32 %v855_v2, %v782_v13  ;;  %v1240_v4 = vmul.f32 0.5, %v2841_v48  ;;  %v2842_v52 = vld [vmem:[#allocation17_spill] sm:$0xff]  ;;  %v1356_v13 = vpop.permute.xlu0 %1355 }
 0x2a4   : > { %v783_v51 = vadd.f32 %v775_v61, %v702_v60  ;;  %v952_v50 = vadd.f32 %v944_v12, %v871_v5  ;;  %v1344_v57 = vmul.f32 %v1340_v18, %v1240_v4  ;;  %v1343_v60 = vmul.f32 %v1339_v32, %v1239_v39  ;;  %v1351_v61 = vld [vmem:[%s2774_s5] sm:$0xf] }
 0x2a6   : > { %v847_v35 = vpop.permute.xlu1 %846  ;;  %v1033_v38 = vadd.f32 %v1025_v14, %v952_v50 }
 0x2a7   : > { %v856_v31 = vsel %vm848_vm11, %v2558_v36, %v847_v35  ;;  %v1155_v36 = vsel %vm1148_vm6, %v1143_v6, %v2836_v3 }
 0x2a8   : > { %v872_v0 = vadd.f32 %v856_v31, %v783_v51  ;;  %v1171_v53 = vsel %vm2190_vm8, %v1155_v36, 0.0 }
 0x2a9   : > { %v1195_v17 = vmul.f32 %v2840_v15, %v1171_v53 }
 0x2aa   : > { %v953_v23 = vadd.f32 %v945_v30, %v872_v0  ;;  %v1098_v59 = vpop.permute.xlu1 %1097 }
 0x2ab   : > { %v1107_v19 = vsel %vm1099_vm14, %v2575_v26, %v1098_v59 }
 0x2ac   : > { %v1034_v24 = vadd.f32 %v1026_v29, %v953_v23 }
 0x2ae   : > { %v1123_v21 = vadd.f32 %v1107_v19, %v1034_v24  ;;  %v1094_v8 = vpop.permute.xlu1 %1093 }
 0x2af   : > { %v1106_v44 = vsel %vm1099_vm14, %v1094_v8, %v2575_v26 }
 0x2b0   : > { %v1204_v34 = vadd.f32 %v1196_v54, %v1123_v21  ;;  %v1122_v25 = vadd.f32 %v1106_v44, %v1033_v38 }
 0x2b2   : > { %v1203_v1 = vadd.f32 %v1195_v17, %v1122_v25  ;;  %v1236_v22 = vadd.f32 %v2842_v52, %v1204_v34 }
 0x2b4   : > { %v1348_v9 = vmul.f32 %v1344_v57, %v1236_v22  ;;  %v1235_v27 = vadd.f32 %v2842_v52, %v1203_v1 }
 0x2b6   : > { %v1350_v26 = vpack.c.bf16 %v1348_v9, %v1346_v16  ;;  %v1347_v6 = vmul.f32 %v1343_v60, %v1235_v27 }
 0x2b8   : > { %1362 = vmatprep.subr.bf16.mxu1 %v1350_v26  ;;  %v1349_v43 = vpack.c.bf16 %v1347_v6, %v2610_v40 }
 0x2ba   : > { %1363 = vmatpush1.bf16.msra.mxu1 %v1349_v43 }
 0x2bd   : > { %1493 = vmatmul.mubr.msk.bf16.vlgmr.msra.gmra.mrb[0].mxu1 %vm1358_vm3, %v1351_v61 }
 0x390   : > { %v1396_v47 = vpop.f32.mrb[0].mxu1 }
 0x391   : > { %v1397_v16 = vadd.f32 %v1396_v47, %v1356_v13  ;;  %v1398_v28 = vpop.f32.mrb[1].mxu1 }
 0x392   : > { %v1399_v33 = vadd.f32 %v1398_v28, %v1356_v13  ;;  %v1400_v62 = vpop.f32.mrb[2].mxu1 }
 0x393   : > { %1403 = vst [vmem:[%s271_s20] sm:$0xff] %v1397_v16  ;;  %v1401_v40 = vpop.f32.mrb[3].mxu1 }
 0x394   : > { %1404 = vst [vmem:[%s271_s20 + $0x8] sm:$0xff] %v1399_v33 }
 0x395   : > { %1620 = shalt.err (!%p1617_p3)
}
 0x396   : > { %s1621_s15 = scalar_lea.hbm %s2727_s29, 256  ;;  %s1625_s18 = scalar_lea.hbm %s2776_s7, 512 }
 0x397   : > { %p1622_p4 = scmp.ne.s32.totalorder %s2727_s29, %s1621_s15  ;;  %p1626_p9 = scmp.lt.u32.totalorder %s2727_s29, %s2776_s7 }
 0x398   : > { %p1627_p10 = scmp.lt.u32.totalorder %s1625_s18, %s1621_s15  ;;  %p1629_p12 = scmp.lt.u32.totalorder %s1621_s15, %s2727_s29 }
 0x399   : > { %p1623_p7 = pnand %p1622_p4, %p1768_p5 }
 0x39a   : > { %p1628_p11 = por %p1627_p10, %p1626_p9 }
 0x39b   : > { %p1624_p8 = pneg %p1623_p7 }
 0x39c   : > { %p1630_p13 = por %p1629_p12, %p1628_p11 }
 0x39e   : > { %p1631_p0 = pnand %p1630_p13, %p1624_p8 }
 0x3a0   : > { %1634 = shalt.err (!%p1631_p0)
}
 0x3a1   : > { %1501 = dma.vmem_to_hbm [thread:$0]  (%p1768_p5), %s2729_s21, 256, %s2727_s29, %s1406_s28  }
 0x3a2 PF: > { %p1507_p1 = scmp.ge.s32.totalorder %s1669_s27, 2  ;;  %s1432_s22 = sand.u32 1, %s1657_s24  }
 0x3a3   : > { %s1433_s23 = scalar_lea.sflag [#allocation3], %s1432_s22 }
 0x3a4   : > { %p1504_p2 = pnand %p1507_p1, %p1772_p6 }
 0x3a6   : > { %1652 = dma.done.wait (!%p1504_p2), %s1433_s23, 256  }
 0x3a7   : > { %1654 = vsyncadd (!%p1504_p2), %s1433_s23, 4294967040  ;;  %p17_p3 = scmp.ge.s32.totalorder %s1755_s30, 4   ;;  %s2844_s24 = smov %s1661_s25 }
 0x3a8   : > { %s2845_s25 = smov %s1665_s26  ;;  %s2846_s26 = smov %s1766_s10 }
 0x3a9   : > { %s2847_s27 = smov %s1755_s30  ;;  %19 = sbr.rel (!%p17_p3) target bundleno = 3 (0x3), region = 83 }
 0x3b0   :  { %1438 = vsyncpa [#allocation3], 1 }
 0x3b1   :  { %1440 = vsyncpa [#allocation3 + $0x1], 1 }

</bundles_post_ra>
